<compile_context>
chip_gen: v7x
topology: tpu7x:2x2x1
jax: 0.10.0
libtpu: 0.0.40
codegen_flags: <defaults>
</compile_context>

<pallas_src>
import math
import functools

import jax
import jax.numpy as jnp
from jax.experimental import pallas as pl
from jax.experimental.pallas import tpu as pltpu


# ---------------------------------------------------------------------------
# Fused forward kernel: one grid step == (one batch block, one encoder layer)
# ---------------------------------------------------------------------------
def _transformer_fwd_kernel(src_ref, w_in_ref, b_in_ref, pe_ref,
                            wqkv_ref, bqkv_ref, wo_ref, bo_ref,
                            ln1g_ref, ln1b_ref, w1_ref, b1_ref,
                            w2_ref, b2_ref, ln2g_ref, ln2b_ref,
                            wdec_ref, bdec_ref,
                            out_ref, x_ref, *, nhead):
    l = pl.program_id(1)
    num_layers = pl.num_programs(1)

    Bt, S, I = src_ref.shape
    D = w_in_ref.shape[1]
    hd = D // nhead
    M = Bt * S
    scale = 1.0 / math.sqrt(hd)

    def layernorm(z, g, b):                       # f32 throughout
        mu = jnp.mean(z, axis=-1, keepdims=True)
        var = jnp.mean((z - mu) ** 2, axis=-1, keepdims=True)
        return (z - mu) * jax.lax.rsqrt(var + 1e-5) * g + b

    # ---- layer 0 only: input projection + positional encoding -> x_ref ----
    @pl.when(l == 0)
    def _():
        src = src_ref[...].reshape(M, I).astype(jnp.bfloat16)
        x0 = (jnp.dot(src, w_in_ref[...], preferred_element_type=jnp.float32)
              + b_in_ref[...])                                   # (M, D) f32
        x0 = x0.reshape(Bt, S, D) + pe_ref[...]                  # PE broadcast over Bt
        x_ref[...] = x0.reshape(M, D)

    # ---- one encoder layer; this layer's weights are streamed by BlockSpec --
    x = x_ref[...]                                               # (M, D) f32
    x_bf = x.astype(jnp.bfloat16)

    # Packed QKV projection: one MXU pass with N = 3*D, M = Bt*S rows.
    qkv = (jnp.dot(x_bf, wqkv_ref[0], preferred_element_type=jnp.float32)
           + bqkv_ref[0])                                        # (M, 3D) f32
    qkv3 = qkv.reshape(Bt, S, 3 * D)

    # Multi-head self-attention, batched over Bt via 3-D einsums; every head
    # context is a lane-dense value (no VMEM scratch slab, no masked stores).
    # TODO(synk): replace the head loop with one (Bt*nhead)-batched dot_general
    # once the (Bt,S,nhead,hd)->(Bt,nhead,S,hd) relayout is done via einshape.
    ctx_heads = []
    for h in range(nhead):
        qh = qkv3[:, :, h * hd:(h + 1) * hd].astype(jnp.bfloat16)           # (Bt,S,hd)
        kh = qkv3[:, :, D + h * hd:D + (h + 1) * hd].astype(jnp.bfloat16)
        vh = qkv3[:, :, 2 * D + h * hd:2 * D + (h + 1) * hd].astype(jnp.bfloat16)
        s = jnp.einsum('bqd,bkd->bqk', qh, kh,
                       preferred_element_type=jnp.float32) * scale          # (Bt,S,S)
        s = s - jnp.max(s, axis=-1, keepdims=True)
        p = jnp.exp(s)
        p = p * pl.reciprocal(jnp.sum(p, axis=-1, keepdims=True), approx=True)
        ctx_heads.append(jnp.einsum('bqk,bkd->bqd', p.astype(jnp.bfloat16), vh,
                                    preferred_element_type=jnp.float32))    # (Bt,S,hd)
    ctx = jnp.concatenate(ctx_heads, axis=-1).reshape(M, D)                  # (M, D) f32

    attn = (jnp.dot(ctx.astype(jnp.bfloat16), wo_ref[0],
                    preferred_element_type=jnp.float32) + bo_ref[0])

    # Residual + LayerNorm1 (dropout = identity in eval mode).
    x1 = layernorm(x + attn, ln1g_ref[0], ln1b_ref[0])

    # Feed-forward: Linear -> ReLU -> Linear (bf16 operands, f32 accumulation).
    # TODO(synk): tile over F when dim_feedforward is large (>= 2048).
    h1 = jnp.maximum(
        jnp.dot(x1.astype(jnp.bfloat16), w1_ref[0],
                preferred_element_type=jnp.float32) + b1_ref[0], 0.0)
    ff = (jnp.dot(h1.astype(jnp.bfloat16), w2_ref[0],
                  preferred_element_type=jnp.float32) + b2_ref[0])

    # Residual + LayerNorm2; write carried activation back for the next layer.
    x2 = layernorm(x1 + ff, ln2g_ref[0], ln2b_ref[0])
    x_ref[...] = x2

    # ---- last layer only: decoder on the final sequence position ----
    @pl.when(l == num_layers - 1)
    def _():
        x_last = x2.reshape(Bt, S, D)[:, S - 1:S, :].reshape(Bt, D)
        out_ref[...] = (jnp.dot(x_last.astype(jnp.bfloat16), wdec_ref[...],
                                preferred_element_type=jnp.float32)
                        + bdec_ref[...])


# ---------------------------------------------------------------------------
# Wrapper (single pallas_call; grid = (batch blocks, layers))
# ---------------------------------------------------------------------------
def transformer_model_forward(src, params, pe, nhead, *, batch_block=None):
    B, S, I = src.shape
    D = params["w_in"].shape[1]
    F = params["w1"].shape[2]
    O = params["w_dec"].shape[1]
    L = params["wqkv"].shape[0]

    Bt = B if batch_block is None else batch_block
    assert B % Bt == 0

    # Generation-aware VMEM budget (v5e/v6e 128 MiB physical, v7x 64 MiB).
    try:
        vmem_cap = int(pltpu.get_tpu_info().vmem_capacity_bytes)
    except Exception:
        vmem_cap = 64 * 1024 * 1024
    vmem_limit = int(min(vmem_cap * 3 // 4, 100 * 1024 * 1024))

    def rep(shape):          # grid-invariant: block index 0 everywhere (fetched once)
        return pl.BlockSpec(shape, lambda b, l, _n=len(shape): (0,) * _n)

    def per_layer(shape):    # streamed per layer along the L ("arbitrary") grid axis
        return pl.BlockSpec((1,) + shape,
                            lambda b, l, _n=len(shape): (l,) + (0,) * _n)

    kernel = functools.partial(_transformer_fwd_kernel, nhead=nhead)

    return pl.pallas_call(
        kernel,
        out_shape=jax.ShapeDtypeStruct((B, O), jnp.float32),
        grid=(B // Bt, L),
        in_specs=[
            pl.BlockSpec((Bt, S, I), lambda b, l: (b, 0, 0)),     # src
            rep((I, D)), rep((1, D)),                             # input proj (bf16/f32)
            rep((S, D)),                                          # positional encoding
            per_layer((D, 3 * D)), per_layer((1, 3 * D)),         # packed QKV
            per_layer((D, D)), per_layer((1, D)),                 # attn out proj
            per_layer((1, D)), per_layer((1, D)),                 # ln1 gamma, beta
            per_layer((D, F)), per_layer((1, F)),                 # ffn w1, b1
            per_layer((F, D)), per_layer((1, D)),                 # ffn w2, b2
            per_layer((1, D)), per_layer((1, D)),                 # ln2 gamma, beta
            rep((D, O)), rep((1, O)),                             # decoder
        ],
        out_specs=pl.BlockSpec((Bt, O), lambda b, l: (b, 0)),
        scratch_shapes=[pltpu.VMEM((Bt * S, D), jnp.float32)],    # carried activation
        compiler_params=pltpu.CompilerParams(
            # Batch axis parallel (v7x megacore); layer axis is a carried loop.
            # NOTE: on v7x with tiny B and huge weights prefer ("arbitrary", ...)
            # to avoid duplicating the per-layer weight DMA on both TCs.
            dimension_semantics=("parallel", "arbitrary"),
            vmem_limit_bytes=vmem_limit,
        ),
    )(src,
      params["w_in"], params["b_in"], pe,
      params["wqkv"], params["bqkv"], params["wo"], params["bo"],
      params["ln1_g"], params["ln1_b"],
      params["w1"], params["b1"], params["w2"], params["b2"],
      params["ln2_g"], params["ln2_b"],
      params["w_dec"], params["b_dec"])


# ---------------------------------------------------------------------------
# Parameter construction (deterministic, synthetic); big matrices in bf16.
# ---------------------------------------------------------------------------
def make_pe_table(S, d_model):
    position = jnp.arange(S, dtype=jnp.float32)[:, None]
    div_term = jnp.exp(jnp.arange(0, d_model, 2, dtype=jnp.float32)
                       * (-math.log(10000.0) / d_model))
    pe = jnp.zeros((S, d_model), jnp.float32)
    pe = pe.at[:, 0::2].set(jnp.sin(position * div_term))
    pe = pe.at[:, 1::2].set(jnp.cos(position * div_term))
    return pe


def init_params(key, input_dim, d_model, dim_feedforward, output_dim, num_layers):
    def nrm(k, shape, scale=0.05):
        return (scale * jax.random.normal(k, shape, jnp.float32)).astype(jnp.bfloat16)

    keys = jax.random.split(key, 2 + num_layers)
    params = {
        "w_in": nrm(keys[0], (input_dim, d_model)),
        "b_in": jnp.zeros((1, d_model), jnp.float32),
        "w_dec": nrm(keys[1], (d_model, output_dim)),
        "b_dec": jnp.zeros((1, output_dim), jnp.float32),
    }
    wqkv, bqkv, wo, bo = [], [], [], []
    ln1g, ln1b, w1, b1, w2, b2, ln2g, ln2b = [], [], [], [], [], [], [], []
    for l in range(num_layers):
        lk = jax.random.split(keys[2 + l], 6)
        # Pack wq | wk | wv along the output axis -> one (D, 3D) bf16 matmul.
        wqkv.append(jnp.concatenate(
            [nrm(lk[0], (d_model, d_model)),
             nrm(lk[1], (d_model, d_model)),
             nrm(lk[2], (d_model, d_model))], axis=1))
        bqkv.append(jnp.zeros((1, 3 * d_model), jnp.float32))
        wo.append(nrm(lk[3], (d_model, d_model)))
        bo.append(jnp.zeros((1, d_model), jnp.float32))
        ln1g.append(jnp.ones((1, d_model), jnp.float32))
        ln1b.append(jnp.zeros((1, d_model), jnp.float32))
        w1.append(nrm(lk[4], (d_model, dim_feedforward)))
        b1.append(jnp.zeros((1, dim_feedforward), jnp.float32))
        w2.append(nrm(lk[5], (dim_feedforward, d_model)))
        b2.append(jnp.zeros((1, d_model), jnp.float32))
        ln2g.append(jnp.ones((1, d_model), jnp.float32))
        ln2b.append(jnp.zeros((1, d_model), jnp.float32))
    params.update(
        wqkv=jnp.stack(wqkv), bqkv=jnp.stack(bqkv),
        wo=jnp.stack(wo), bo=jnp.stack(bo),
        ln1_g=jnp.stack(ln1g), ln1_b=jnp.stack(ln1b),
        w1=jnp.stack(w1), b1=jnp.stack(b1),
        w2=jnp.stack(w2), b2=jnp.stack(b2),
        ln2_g=jnp.stack(ln2g), ln2_b=jnp.stack(ln2b),
    )
    return params


# ---------------------------------------------------------------------------
if __name__ == "__main__":
    # Small, module-consistent shapes.
    B, S = 2, 8
    input_dim, d_model, nhead = 16, 32, 4
    dim_feedforward, output_dim, num_layers = 64, 8, 2

    key = jax.random.PRNGKey(0)
    k_x, k_p = jax.random.split(key)
    src = jax.random.normal(k_x, (B, S, input_dim), jnp.float32)

    params = init_params(k_p, input_dim, d_model, dim_feedforward,
                         output_dim, num_layers)
    pe = make_pe_table(S, d_model)

    out = transformer_model_forward(src, params, pe, nhead)
    out = jax.block_until_ready(out)
    assert out.shape == (B, output_dim)
    print("KERNEL_OK")
</pallas_src>

<mosaic_0001>
module attributes {stable_mosaic.version = 11 : i64} {
  func.func @_transformer_fwd_kernel(%arg0: i32, %arg1: i32, %arg2: memref<2x8x16xf32, #tpu.memory_space<vmem>>, %arg3: memref<16x32xbf16, #tpu.memory_space<vmem>>, %arg4: memref<1x32xf32, #tpu.memory_space<vmem>>, %arg5: memref<8x32xf32, #tpu.memory_space<vmem>>, %arg6: memref<1x32x96xbf16, #tpu.memory_space<vmem>>, %arg7: memref<1x1x96xf32, #tpu.memory_space<vmem>>, %arg8: memref<1x32x32xbf16, #tpu.memory_space<vmem>>, %arg9: memref<1x1x32xf32, #tpu.memory_space<vmem>>, %arg10: memref<1x1x32xf32, #tpu.memory_space<vmem>>, %arg11: memref<1x1x32xf32, #tpu.memory_space<vmem>>, %arg12: memref<1x32x64xbf16, #tpu.memory_space<vmem>>, %arg13: memref<1x1x64xf32, #tpu.memory_space<vmem>>, %arg14: memref<1x64x32xbf16, #tpu.memory_space<vmem>>, %arg15: memref<1x1x32xf32, #tpu.memory_space<vmem>>, %arg16: memref<1x1x32xf32, #tpu.memory_space<vmem>>, %arg17: memref<1x1x32xf32, #tpu.memory_space<vmem>>, %arg18: memref<32x8xbf16, #tpu.memory_space<vmem>>, %arg19: memref<1x8xf32, #tpu.memory_space<vmem>>, %arg20: memref<2x8xf32, #tpu.memory_space<vmem>>, %arg21: memref<16x32xf32, #tpu.memory_space<vmem>>) attributes {dimension_semantics = [#tpu.dimension_semantics<parallel>, #tpu.dimension_semantics<arbitrary>], iteration_bounds = array<i64: 1, 2>, scalar_prefetch = 0 : i64, scratch_operands = 1 : i64, tpu.core_type = #tpu.core_type<tc>, window_params = [{transform_indices = @transform_0, window_bounds = array<i64: 2, 8, 16>}, {pipeline_mode = #tpu.pipeline_mode<synchronous>, transform_indices = @transform_1, window_bounds = array<i64: 16, 32>}, {pipeline_mode = #tpu.pipeline_mode<synchronous>, transform_indices = @transform_2, window_bounds = array<i64: 1, 32>}, {pipeline_mode = #tpu.pipeline_mode<synchronous>, transform_indices = @transform_3, window_bounds = array<i64: 8, 32>}, {transform_indices = @transform_4, window_bounds = array<i64: 1, 32, 96>}, {transform_indices = @transform_5, window_bounds = array<i64: 1, 1, 96>}, {transform_indices = @transform_6, window_bounds = array<i64: 1, 32, 32>}, {transform_indices = @transform_7, window_bounds = array<i64: 1, 1, 32>}, {transform_indices = @transform_8, window_bounds = array<i64: 1, 1, 32>}, {transform_indices = @transform_9, window_bounds = array<i64: 1, 1, 32>}, {transform_indices = @transform_10, window_bounds = array<i64: 1, 32, 64>}, {transform_indices = @transform_11, window_bounds = array<i64: 1, 1, 64>}, {transform_indices = @transform_12, window_bounds = array<i64: 1, 64, 32>}, {transform_indices = @transform_13, window_bounds = array<i64: 1, 1, 32>}, {transform_indices = @transform_14, window_bounds = array<i64: 1, 1, 32>}, {transform_indices = @transform_15, window_bounds = array<i64: 1, 1, 32>}, {pipeline_mode = #tpu.pipeline_mode<synchronous>, transform_indices = @transform_16, window_bounds = array<i64: 32, 8>}, {pipeline_mode = #tpu.pipeline_mode<synchronous>, transform_indices = @transform_17, window_bounds = array<i64: 1, 8>}, {transform_indices = @transform_18, window_bounds = array<i64: 2, 8>}]} {
    %c0_i32 = arith.constant 0 : i32
    %0 = arith.cmpi eq, %arg1, %c0_i32 : i32
    %1 = arith.extui %0 : i1 to i32
    %c0_i32_0 = arith.constant 0 : i32
    %2 = arith.cmpi ne, %1, %c0_i32_0 : i32
    scf.if %2 {
      %c0_75 = arith.constant 0 : index
      %c0_76 = arith.constant 0 : index
      %c0_77 = arith.constant 0 : index
      %183 = vector.load %arg2[%c0_75, %c0_76, %c0_77] : memref<2x8x16xf32, #tpu.memory_space<vmem>>, vector<2x8x16xf32>
      %184 = vector.shape_cast %183 : vector<2x8x16xf32> to vector<16x16xf32>
      %185 = arith.truncf %184 : vector<16x16xf32> to vector<16x16xbf16>
      %c0_78 = arith.constant 0 : index
      %c0_79 = arith.constant 0 : index
      %186 = vector.load %arg3[%c0_78, %c0_79] : memref<16x32xbf16, #tpu.memory_space<vmem>>, vector<16x32xbf16>
      %cst_80 = arith.constant dense<0.000000e+00> : vector<16x32xf32>
      %187 = tpu.matmul %185, %186, %cst_80 {dimension_numbers = #tpu.dot_dimension_numbers<[1], [0], [0], [1], [0, 0, 1, 1], [], []>} : vector<16x16xbf16>, vector<16x32xbf16>, vector<16x32xf32> -> vector<16x32xf32>
      %c0_81 = arith.constant 0 : index
      %c0_82 = arith.constant 0 : index
      %188 = vector.load %arg4[%c0_81, %c0_82] : memref<1x32xf32, #tpu.memory_space<vmem>>, vector<1x32xf32>
      %189 = vector.broadcast %188 : vector<1x32xf32> to vector<16x32xf32>
      %190 = arith.addf %187, %189 : vector<16x32xf32>
      %191 = vector.shape_cast %190 : vector<16x32xf32> to vector<2x8x32xf32>
      %c0_83 = arith.constant 0 : index
      %c0_84 = arith.constant 0 : index
      %192 = vector.load %arg5[%c0_83, %c0_84] : memref<8x32xf32, #tpu.memory_space<vmem>>, vector<8x32xf32>
      %193 = vector.shape_cast %192 : vector<8x32xf32> to vector<1x8x32xf32>
      %194 = vector.broadcast %193 : vector<1x8x32xf32> to vector<2x8x32xf32>
      %195 = arith.addf %191, %194 : vector<2x8x32xf32>
      %196 = vector.shape_cast %195 : vector<2x8x32xf32> to vector<16x32xf32>
      %c0_85 = arith.constant 0 : index
      %c0_86 = arith.constant 0 : index
      %197 = vector.load %arg21[%c0_85, %c0_86] : memref<16x32xf32, #tpu.memory_space<vmem>>, vector<16x32xf32>
      tpu.vector_store %arg21[%c0_85, %c0_86], %196 {strides = array<i32>} : memref<16x32xf32, #tpu.memory_space<vmem>>, vector<16x32xf32>,
    } else {
    }
    %c0 = arith.constant 0 : index
    %c0_1 = arith.constant 0 : index
    %3 = vector.load %arg21[%c0, %c0_1] : memref<16x32xf32, #tpu.memory_space<vmem>>, vector<16x32xf32>
    %4 = arith.truncf %3 : vector<16x32xf32> to vector<16x32xbf16>
    %c0_2 = arith.constant 0 : index
    %c0_3 = arith.constant 0 : index
    %c0_4 = arith.constant 0 : index
    %5 = vector.load %arg6[%c0_2, %c0_3, %c0_4] : memref<1x32x96xbf16, #tpu.memory_space<vmem>>, vector<1x32x96xbf16>
    %6 = vector.shape_cast %5 : vector<1x32x96xbf16> to vector<32x96xbf16>
    %cst = arith.constant dense<0.000000e+00> : vector<16x96xf32>
    %7 = tpu.matmul %4, %6, %cst {dimension_numbers = #tpu.dot_dimension_numbers<[1], [0], [0], [1], [0, 0, 1, 1], [], []>} : vector<16x32xbf16>, vector<32x96xbf16>, vector<16x96xf32> -> vector<16x96xf32>
    %c0_5 = arith.constant 0 : index
    %c0_6 = arith.constant 0 : index
    %c0_7 = arith.constant 0 : index
    %8 = vector.load %arg7[%c0_5, %c0_6, %c0_7] : memref<1x1x96xf32, #tpu.memory_space<vmem>>, vector<1x1x96xf32>
    %9 = vector.shape_cast %8 : vector<1x1x96xf32> to vector<1x96xf32>
    %10 = vector.broadcast %9 : vector<1x96xf32> to vector<16x96xf32>
    %11 = arith.addf %7, %10 : vector<16x96xf32>
    %12 = vector.shape_cast %11 : vector<16x96xf32> to vector<2x8x96xf32>
    %13 = vector.extract_strided_slice %12 {offsets = [0, 0, 0], sizes = [2, 8, 8], strides = [1, 1, 1]} : vector<2x8x96xf32> to vector<2x8x8xf32>
    %14 = arith.truncf %13 : vector<2x8x8xf32> to vector<2x8x8xbf16>
    %15 = vector.extract_strided_slice %12 {offsets = [0, 0, 32], sizes = [2, 8, 8], strides = [1, 1, 1]} : vector<2x8x96xf32> to vector<2x8x8xf32>
    %16 = arith.truncf %15 : vector<2x8x8xf32> to vector<2x8x8xbf16>
    %17 = vector.extract_strided_slice %12 {offsets = [0, 0, 64], sizes = [2, 8, 8], strides = [1, 1, 1]} : vector<2x8x96xf32> to vector<2x8x8xf32>
    %18 = arith.truncf %17 : vector<2x8x8xf32> to vector<2x8x8xbf16>
    "tpu.trace_start"() <{level = 10 : i32, message = "bqd,bkd->bqk"}> : () -> ()
    %cst_8 = arith.constant dense<0.000000e+00> : vector<2x8x8xf32>
    %19 = tpu.matmul %14, %16, %cst_8 {dimension_numbers = #tpu.dot_dimension_numbers<[2], [2], [1], [1], [0, 0, 0, 1, 1, 1], [0], [0]>} : vector<2x8x8xbf16>, vector<2x8x8xbf16>, vector<2x8x8xf32> -> vector<2x8x8xf32>
    "tpu.trace_stop"() : () -> ()
    %cst_9 = arith.constant 0.353553385 : f32
    %20 = vector.broadcast %cst_9 : f32 to vector<2x8x8xf32>
    %21 = arith.mulf %19, %20 : vector<2x8x8xf32>
    %cst_10 = arith.constant dense<0xFF800000> : vector<2x8xf32>
    %22 = vector.multi_reduction <maximumf>, %21, %cst_10 [2] : vector<2x8x8xf32> to vector<2x8xf32>
    %23 = vector.shape_cast %22 : vector<2x8xf32> to vector<2x8x1xf32>
    %24 = vector.broadcast %23 : vector<2x8x1xf32> to vector<2x8x8xf32>
    %25 = arith.subf %21, %24 : vector<2x8x8xf32>
    %26 = math.exp %25 : vector<2x8x8xf32>
    %cst_11 = arith.constant dense<0.000000e+00> : vector<2x8xf32>
    %27 = vector.multi_reduction <add>, %26, %cst_11 [2] : vector<2x8x8xf32> to vector<2x8xf32>
    %28 = vector.shape_cast %27 : vector<2x8xf32> to vector<2x8x1xf32>
    %29 = tpu.reciprocal %28 {approx = true} : vector<2x8x1xf32> -> vector<2x8x1xf32>
    %30 = vector.broadcast %29 : vector<2x8x1xf32> to vector<2x8x8xf32>
    %31 = arith.mulf %26, %30 : vector<2x8x8xf32>
    %32 = arith.truncf %31 : vector<2x8x8xf32> to vector<2x8x8xbf16>
    "tpu.trace_start"() <{level = 10 : i32, message = "bqk,bkd->bqd"}> : () -> ()
    %cst_12 = arith.constant dense<0.000000e+00> : vector<2x8x8xf32>
    %33 = tpu.matmul %32, %18, %cst_12 {dimension_numbers = #tpu.dot_dimension_numbers<[2], [1], [1], [2], [0, 0, 0, 1, 1, 2], [0], [0]>} : vector<2x8x8xbf16>, vector<2x8x8xbf16>, vector<2x8x8xf32> -> vector<2x8x8xf32>
    "tpu.trace_stop"() : () -> ()
    %34 = vector.extract_strided_slice %12 {offsets = [0, 0, 8], sizes = [2, 8, 8], strides = [1, 1, 1]} : vector<2x8x96xf32> to vector<2x8x8xf32>
    %35 = arith.truncf %34 : vector<2x8x8xf32> to vector<2x8x8xbf16>
    %36 = vector.extract_strided_slice %12 {offsets = [0, 0, 40], sizes = [2, 8, 8], strides = [1, 1, 1]} : vector<2x8x96xf32> to vector<2x8x8xf32>
    %37 = arith.truncf %36 : vector<2x8x8xf32> to vector<2x8x8xbf16>
    %38 = vector.extract_strided_slice %12 {offsets = [0, 0, 72], sizes = [2, 8, 8], strides = [1, 1, 1]} : vector<2x8x96xf32> to vector<2x8x8xf32>
    %39 = arith.truncf %38 : vector<2x8x8xf32> to vector<2x8x8xbf16>
    "tpu.trace_start"() <{level = 10 : i32, message = "bqd,bkd->bqk"}> : () -> ()
    %cst_13 = arith.constant dense<0.000000e+00> : vector<2x8x8xf32>
    %40 = tpu.matmul %35, %37, %cst_13 {dimension_numbers = #tpu.dot_dimension_numbers<[2], [2], [1], [1], [0, 0, 0, 1, 1, 1], [0], [0]>} : vector<2x8x8xbf16>, vector<2x8x8xbf16>, vector<2x8x8xf32> -> vector<2x8x8xf32>
    "tpu.trace_stop"() : () -> ()
    %cst_14 = arith.constant 0.353553385 : f32
    %41 = vector.broadcast %cst_14 : f32 to vector<2x8x8xf32>
    %42 = arith.mulf %40, %41 : vector<2x8x8xf32>
    %cst_15 = arith.constant dense<0xFF800000> : vector<2x8xf32>
    %43 = vector.multi_reduction <maximumf>, %42, %cst_15 [2] : vector<2x8x8xf32> to vector<2x8xf32>
    %44 = vector.shape_cast %43 : vector<2x8xf32> to vector<2x8x1xf32>
    %45 = vector.broadcast %44 : vector<2x8x1xf32> to vector<2x8x8xf32>
    %46 = arith.subf %42, %45 : vector<2x8x8xf32>
    %47 = math.exp %46 : vector<2x8x8xf32>
    %cst_16 = arith.constant dense<0.000000e+00> : vector<2x8xf32>
    %48 = vector.multi_reduction <add>, %47, %cst_16 [2] : vector<2x8x8xf32> to vector<2x8xf32>
    %49 = vector.shape_cast %48 : vector<2x8xf32> to vector<2x8x1xf32>
    %50 = tpu.reciprocal %49 {approx = true} : vector<2x8x1xf32> -> vector<2x8x1xf32>
    %51 = vector.broadcast %50 : vector<2x8x1xf32> to vector<2x8x8xf32>
    %52 = arith.mulf %47, %51 : vector<2x8x8xf32>
    %53 = arith.truncf %52 : vector<2x8x8xf32> to vector<2x8x8xbf16>
    "tpu.trace_start"() <{level = 10 : i32, message = "bqk,bkd->bqd"}> : () -> ()
    %cst_17 = arith.constant dense<0.000000e+00> : vector<2x8x8xf32>
    %54 = tpu.matmul %53, %39, %cst_17 {dimension_numbers = #tpu.dot_dimension_numbers<[2], [1], [1], [2], [0, 0, 0, 1, 1, 2], [0], [0]>} : vector<2x8x8xbf16>, vector<2x8x8xbf16>, vector<2x8x8xf32> -> vector<2x8x8xf32>
    "tpu.trace_stop"() : () -> ()
    %55 = vector.extract_strided_slice %12 {offsets = [0, 0, 16], sizes = [2, 8, 8], strides = [1, 1, 1]} : vector<2x8x96xf32> to vector<2x8x8xf32>
    %56 = arith.truncf %55 : vector<2x8x8xf32> to vector<2x8x8xbf16>
    %57 = vector.extract_strided_slice %12 {offsets = [0, 0, 48], sizes = [2, 8, 8], strides = [1, 1, 1]} : vector<2x8x96xf32> to vector<2x8x8xf32>
    %58 = arith.truncf %57 : vector<2x8x8xf32> to vector<2x8x8xbf16>
    %59 = vector.extract_strided_slice %12 {offsets = [0, 0, 80], sizes = [2, 8, 8], strides = [1, 1, 1]} : vector<2x8x96xf32> to vector<2x8x8xf32>
    %60 = arith.truncf %59 : vector<2x8x8xf32> to vector<2x8x8xbf16>
    "tpu.trace_start"() <{level = 10 : i32, message = "bqd,bkd->bqk"}> : () -> ()
    %cst_18 = arith.constant dense<0.000000e+00> : vector<2x8x8xf32>
    %61 = tpu.matmul %56, %58, %cst_18 {dimension_numbers = #tpu.dot_dimension_numbers<[2], [2], [1], [1], [0, 0, 0, 1, 1, 1], [0], [0]>} : vector<2x8x8xbf16>, vector<2x8x8xbf16>, vector<2x8x8xf32> -> vector<2x8x8xf32>
    "tpu.trace_stop"() : () -> ()
    %cst_19 = arith.constant 0.353553385 : f32
    %62 = vector.broadcast %cst_19 : f32 to vector<2x8x8xf32>
    %63 = arith.mulf %61, %62 : vector<2x8x8xf32>
    %cst_20 = arith.constant dense<0xFF800000> : vector<2x8xf32>
    %64 = vector.multi_reduction <maximumf>, %63, %cst_20 [2] : vector<2x8x8xf32> to vector<2x8xf32>
    %65 = vector.shape_cast %64 : vector<2x8xf32> to vector<2x8x1xf32>
    %66 = vector.broadcast %65 : vector<2x8x1xf32> to vector<2x8x8xf32>
    %67 = arith.subf %63, %66 : vector<2x8x8xf32>
    %68 = math.exp %67 : vector<2x8x8xf32>
    %cst_21 = arith.constant dense<0.000000e+00> : vector<2x8xf32>
    %69 = vector.multi_reduction <add>, %68, %cst_21 [2] : vector<2x8x8xf32> to vector<2x8xf32>
    %70 = vector.shape_cast %69 : vector<2x8xf32> to vector<2x8x1xf32>
    %71 = tpu.reciprocal %70 {approx = true} : vector<2x8x1xf32> -> vector<2x8x1xf32>
    %72 = vector.broadcast %71 : vector<2x8x1xf32> to vector<2x8x8xf32>
    %73 = arith.mulf %68, %72 : vector<2x8x8xf32>
    %74 = arith.truncf %73 : vector<2x8x8xf32> to vector<2x8x8xbf16>
    "tpu.trace_start"() <{level = 10 : i32, message = "bqk,bkd->bqd"}> : () -> ()
    %cst_22 = arith.constant dense<0.000000e+00> : vector<2x8x8xf32>
    %75 = tpu.matmul %74, %60, %cst_22 {dimension_numbers = #tpu.dot_dimension_numbers<[2], [1], [1], [2], [0, 0, 0, 1, 1, 2], [0], [0]>} : vector<2x8x8xbf16>, vector<2x8x8xbf16>, vector<2x8x8xf32> -> vector<2x8x8xf32>
    "tpu.trace_stop"() : () -> ()
    %76 = vector.extract_strided_slice %12 {offsets = [0, 0, 24], sizes = [2, 8, 8], strides = [1, 1, 1]} : vector<2x8x96xf32> to vector<2x8x8xf32>
    %77 = arith.truncf %76 : vector<2x8x8xf32> to vector<2x8x8xbf16>
    %78 = vector.extract_strided_slice %12 {offsets = [0, 0, 56], sizes = [2, 8, 8], strides = [1, 1, 1]} : vector<2x8x96xf32> to vector<2x8x8xf32>
    %79 = arith.truncf %78 : vector<2x8x8xf32> to vector<2x8x8xbf16>
    %80 = vector.extract_strided_slice %12 {offsets = [0, 0, 88], sizes = [2, 8, 8], strides = [1, 1, 1]} : vector<2x8x96xf32> to vector<2x8x8xf32>
    %81 = arith.truncf %80 : vector<2x8x8xf32> to vector<2x8x8xbf16>
    "tpu.trace_start"() <{level = 10 : i32, message = "bqd,bkd->bqk"}> : () -> ()
    %cst_23 = arith.constant dense<0.000000e+00> : vector<2x8x8xf32>
    %82 = tpu.matmul %77, %79, %cst_23 {dimension_numbers = #tpu.dot_dimension_numbers<[2], [2], [1], [1], [0, 0, 0, 1, 1, 1], [0], [0]>} : vector<2x8x8xbf16>, vector<2x8x8xbf16>, vector<2x8x8xf32> -> vector<2x8x8xf32>
    "tpu.trace_stop"() : () -> ()
    %cst_24 = arith.constant 0.353553385 : f32
    %83 = vector.broadcast %cst_24 : f32 to vector<2x8x8xf32>
    %84 = arith.mulf %82, %83 : vector<2x8x8xf32>
    %cst_25 = arith.constant dense<0xFF800000> : vector<2x8xf32>
    %85 = vector.multi_reduction <maximumf>, %84, %cst_25 [2] : vector<2x8x8xf32> to vector<2x8xf32>
    %86 = vector.shape_cast %85 : vector<2x8xf32> to vector<2x8x1xf32>
    %87 = vector.broadcast %86 : vector<2x8x1xf32> to vector<2x8x8xf32>
    %88 = arith.subf %84, %87 : vector<2x8x8xf32>
    %89 = math.exp %88 : vector<2x8x8xf32>
    %cst_26 = arith.constant dense<0.000000e+00> : vector<2x8xf32>
    %90 = vector.multi_reduction <add>, %89, %cst_26 [2] : vector<2x8x8xf32> to vector<2x8xf32>
    %91 = vector.shape_cast %90 : vector<2x8xf32> to vector<2x8x1xf32>
    %92 = tpu.reciprocal %91 {approx = true} : vector<2x8x1xf32> -> vector<2x8x1xf32>
    %93 = vector.broadcast %92 : vector<2x8x1xf32> to vector<2x8x8xf32>
    %94 = arith.mulf %89, %93 : vector<2x8x8xf32>
    %95 = arith.truncf %94 : vector<2x8x8xf32> to vector<2x8x8xbf16>
    "tpu.trace_start"() <{level = 10 : i32, message = "bqk,bkd->bqd"}> : () -> ()
    %cst_27 = arith.constant dense<0.000000e+00> : vector<2x8x8xf32>
    %96 = tpu.matmul %95, %81, %cst_27 {dimension_numbers = #tpu.dot_dimension_numbers<[2], [1], [1], [2], [0, 0, 0, 1, 1, 2], [0], [0]>} : vector<2x8x8xbf16>, vector<2x8x8xbf16>, vector<2x8x8xf32> -> vector<2x8x8xf32>
    "tpu.trace_stop"() : () -> ()
    %97 = tpu.concatenate %33, %54, %75, %96 in 2 : vector<2x8x8xf32>, vector<2x8x8xf32>, vector<2x8x8xf32>, vector<2x8x8xf32> -> vector<2x8x32xf32>
    %98 = vector.shape_cast %97 : vector<2x8x32xf32> to vector<16x32xf32>
    %99 = arith.truncf %98 : vector<16x32xf32> to vector<16x32xbf16>
    %c0_28 = arith.constant 0 : index
    %c0_29 = arith.constant 0 : index
    %c0_30 = arith.constant 0 : index
    %100 = vector.load %arg8[%c0_28, %c0_29, %c0_30] : memref<1x32x32xbf16, #tpu.memory_space<vmem>>, vector<1x32x32xbf16>
    %101 = vector.shape_cast %100 : vector<1x32x32xbf16> to vector<32x32xbf16>
    %cst_31 = arith.constant dense<0.000000e+00> : vector<16x32xf32>
    %102 = tpu.matmul %99, %101, %cst_31 {dimension_numbers = #tpu.dot_dimension_numbers<[1], [0], [0], [1], [0, 0, 1, 1], [], []>} : vector<16x32xbf16>, vector<32x32xbf16>, vector<16x32xf32> -> vector<16x32xf32>
    %c0_32 = arith.constant 0 : index
    %c0_33 = arith.constant 0 : index
    %c0_34 = arith.constant 0 : index
    %103 = vector.load %arg9[%c0_32, %c0_33, %c0_34] : memref<1x1x32xf32, #tpu.memory_space<vmem>>, vector<1x1x32xf32>
    %104 = vector.shape_cast %103 : vector<1x1x32xf32> to vector<1x32xf32>
    %105 = vector.broadcast %104 : vector<1x32xf32> to vector<16x32xf32>
    %106 = arith.addf %102, %105 : vector<16x32xf32>
    %107 = arith.addf %3, %106 : vector<16x32xf32>
    %c0_35 = arith.constant 0 : index
    %c0_36 = arith.constant 0 : index
    %c0_37 = arith.constant 0 : index
    %108 = vector.load %arg10[%c0_35, %c0_36, %c0_37] : memref<1x1x32xf32, #tpu.memory_space<vmem>>, vector<1x1x32xf32>
    %109 = vector.shape_cast %108 : vector<1x1x32xf32> to vector<1x32xf32>
    %c0_38 = arith.constant 0 : index
    %c0_39 = arith.constant 0 : index
    %c0_40 = arith.constant 0 : index
    %110 = vector.load %arg11[%c0_38, %c0_39, %c0_40] : memref<1x1x32xf32, #tpu.memory_space<vmem>>, vector<1x1x32xf32>
    %111 = vector.shape_cast %110 : vector<1x1x32xf32> to vector<1x32xf32>
    %cst_41 = arith.constant dense<0.000000e+00> : vector<16xf32>
    %112 = vector.multi_reduction <add>, %107, %cst_41 [1] : vector<16x32xf32> to vector<16xf32>
    %113 = vector.shape_cast %112 : vector<16xf32> to vector<16x1xf32>
    %cst_42 = arith.constant 3.200000e+01 : f32
    %114 = vector.broadcast %cst_42 : f32 to vector<16x1xf32>
    %115 = arith.divf %113, %114 : vector<16x1xf32>
    %116 = vector.broadcast %115 : vector<16x1xf32> to vector<16x32xf32>
    %117 = arith.subf %107, %116 : vector<16x32xf32>
    %118 = arith.mulf %117, %117 : vector<16x32xf32>
    %cst_43 = arith.constant dense<0.000000e+00> : vector<16xf32>
    %119 = vector.multi_reduction <add>, %118, %cst_43 [1] : vector<16x32xf32> to vector<16xf32>
    %120 = vector.shape_cast %119 : vector<16xf32> to vector<16x1xf32>
    %cst_44 = arith.constant 3.200000e+01 : f32
    %121 = vector.broadcast %cst_44 : f32 to vector<16x1xf32>
    %122 = arith.divf %120, %121 : vector<16x1xf32>
    %123 = vector.broadcast %115 : vector<16x1xf32> to vector<16x32xf32>
    %124 = arith.subf %107, %123 : vector<16x32xf32>
    %cst_45 = arith.constant 9.99999974E-6 : f32
    %125 = vector.broadcast %cst_45 : f32 to vector<16x1xf32>
    %126 = arith.addf %122, %125 : vector<16x1xf32>
    %127 = math.rsqrt %126 : vector<16x1xf32>
    %128 = vector.broadcast %127 : vector<16x1xf32> to vector<16x32xf32>
    %129 = arith.mulf %124, %128 : vector<16x32xf32>
    %130 = vector.broadcast %109 : vector<1x32xf32> to vector<16x32xf32>
    %131 = arith.mulf %129, %130 : vector<16x32xf32>
    %132 = vector.broadcast %111 : vector<1x32xf32> to vector<16x32xf32>
    %133 = arith.addf %131, %132 : vector<16x32xf32>
    %134 = arith.truncf %133 : vector<16x32xf32> to vector<16x32xbf16>
    %c0_46 = arith.constant 0 : index
    %c0_47 = arith.constant 0 : index
    %c0_48 = arith.constant 0 : index
    %135 = vector.load %arg12[%c0_46, %c0_47, %c0_48] : memref<1x32x64xbf16, #tpu.memory_space<vmem>>, vector<1x32x64xbf16>
    %136 = vector.shape_cast %135 : vector<1x32x64xbf16> to vector<32x64xbf16>
    %cst_49 = arith.constant dense<0.000000e+00> : vector<16x64xf32>
    %137 = tpu.matmul %134, %136, %cst_49 {dimension_numbers = #tpu.dot_dimension_numbers<[1], [0], [0], [1], [0, 0, 1, 1], [], []>} : vector<16x32xbf16>, vector<32x64xbf16>, vector<16x64xf32> -> vector<16x64xf32>
    %c0_50 = arith.constant 0 : index
    %c0_51 = arith.constant 0 : index
    %c0_52 = arith.constant 0 : index
    %138 = vector.load %arg13[%c0_50, %c0_51, %c0_52] : memref<1x1x64xf32, #tpu.memory_space<vmem>>, vector<1x1x64xf32>
    %139 = vector.shape_cast %138 : vector<1x1x64xf32> to vector<1x64xf32>
    %140 = vector.broadcast %139 : vector<1x64xf32> to vector<16x64xf32>
    %141 = arith.addf %137, %140 : vector<16x64xf32>
    %cst_53 = arith.constant 0.000000e+00 : f32
    %142 = vector.broadcast %cst_53 : f32 to vector<16x64xf32>
    %143 = arith.maximumf %141, %142 : vector<16x64xf32>
    %144 = arith.truncf %143 : vector<16x64xf32> to vector<16x64xbf16>
    %c0_54 = arith.constant 0 : index
    %c0_55 = arith.constant 0 : index
    %c0_56 = arith.constant 0 : index
    %145 = vector.load %arg14[%c0_54, %c0_55, %c0_56] : memref<1x64x32xbf16, #tpu.memory_space<vmem>>, vector<1x64x32xbf16>
    %146 = vector.shape_cast %145 : vector<1x64x32xbf16> to vector<64x32xbf16>
    %cst_57 = arith.constant dense<0.000000e+00> : vector<16x32xf32>
    %147 = tpu.matmul %144, %146, %cst_57 {dimension_numbers = #tpu.dot_dimension_numbers<[1], [0], [0], [1], [0, 0, 1, 1], [], []>} : vector<16x64xbf16>, vector<64x32xbf16>, vector<16x32xf32> -> vector<16x32xf32>
    %c0_58 = arith.constant 0 : index
    %c0_59 = arith.constant 0 : index
    %c0_60 = arith.constant 0 : index
    %148 = vector.load %arg15[%c0_58, %c0_59, %c0_60] : memref<1x1x32xf32, #tpu.memory_space<vmem>>, vector<1x1x32xf32>
    %149 = vector.shape_cast %148 : vector<1x1x32xf32> to vector<1x32xf32>
    %150 = vector.broadcast %149 : vector<1x32xf32> to vector<16x32xf32>
    %151 = arith.addf %147, %150 : vector<16x32xf32>
    %152 = arith.addf %133, %151 : vector<16x32xf32>
    %c0_61 = arith.constant 0 : index
    %c0_62 = arith.constant 0 : index
    %c0_63 = arith.constant 0 : index
    %153 = vector.load %arg16[%c0_61, %c0_62, %c0_63] : memref<1x1x32xf32, #tpu.memory_space<vmem>>, vector<1x1x32xf32>
    %154 = vector.shape_cast %153 : vector<1x1x32xf32> to vector<1x32xf32>
    %c0_64 = arith.constant 0 : index
    %c0_65 = arith.constant 0 : index
    %c0_66 = arith.constant 0 : index
    %155 = vector.load %arg17[%c0_64, %c0_65, %c0_66] : memref<1x1x32xf32, #tpu.memory_space<vmem>>, vector<1x1x32xf32>
    %156 = vector.shape_cast %155 : vector<1x1x32xf32> to vector<1x32xf32>
    %cst_67 = arith.constant dense<0.000000e+00> : vector<16xf32>
    %157 = vector.multi_reduction <add>, %152, %cst_67 [1] : vector<16x32xf32> to vector<16xf32>
    %158 = vector.shape_cast %157 : vector<16xf32> to vector<16x1xf32>
    %cst_68 = arith.constant 3.200000e+01 : f32
    %159 = vector.broadcast %cst_68 : f32 to vector<16x1xf32>
    %160 = arith.divf %158, %159 : vector<16x1xf32>
    %161 = vector.broadcast %160 : vector<16x1xf32> to vector<16x32xf32>
    %162 = arith.subf %152, %161 : vector<16x32xf32>
    %163 = arith.mulf %162, %162 : vector<16x32xf32>
    %cst_69 = arith.constant dense<0.000000e+00> : vector<16xf32>
    %164 = vector.multi_reduction <add>, %163, %cst_69 [1] : vector<16x32xf32> to vector<16xf32>
    %165 = vector.shape_cast %164 : vector<16xf32> to vector<16x1xf32>
    %cst_70 = arith.constant 3.200000e+01 : f32
    %166 = vector.broadcast %cst_70 : f32 to vector<16x1xf32>
    %167 = arith.divf %165, %166 : vector<16x1xf32>
    %168 = vector.broadcast %160 : vector<16x1xf32> to vector<16x32xf32>
    %169 = arith.subf %152, %168 : vector<16x32xf32>
    %cst_71 = arith.constant 9.99999974E-6 : f32
    %170 = vector.broadcast %cst_71 : f32 to vector<16x1xf32>
    %171 = arith.addf %167, %170 : vector<16x1xf32>
    %172 = math.rsqrt %171 : vector<16x1xf32>
    %173 = vector.broadcast %172 : vector<16x1xf32> to vector<16x32xf32>
    %174 = arith.mulf %169, %173 : vector<16x32xf32>
    %175 = vector.broadcast %154 : vector<1x32xf32> to vector<16x32xf32>
    %176 = arith.mulf %174, %175 : vector<16x32xf32>
    %177 = vector.broadcast %156 : vector<1x32xf32> to vector<16x32xf32>
    %178 = arith.addf %176, %177 : vector<16x32xf32>
    %c0_72 = arith.constant 0 : index
    %c0_73 = arith.constant 0 : index
    %179 = vector.load %arg21[%c0_72, %c0_73] : memref<16x32xf32, #tpu.memory_space<vmem>>, vector<16x32xf32>
    tpu.vector_store %arg21[%c0_72, %c0_73], %178 {strides = array<i32>} : memref<16x32xf32, #tpu.memory_space<vmem>>, vector<16x32xf32>,
    %c1_i32 = arith.constant 1 : i32
    %180 = arith.cmpi eq, %arg1, %c1_i32 : i32
    %181 = arith.extui %180 : i1 to i32
    %c0_i32_74 = arith.constant 0 : i32
    %182 = arith.cmpi ne, %181, %c0_i32_74 : i32
    scf.if %182 {
      %183 = vector.shape_cast %178 : vector<16x32xf32> to vector<2x8x32xf32>
      %184 = vector.extract_strided_slice %183 {offsets = [0, 7, 0], sizes = [2, 1, 32], strides = [1, 1, 1]} : vector<2x8x32xf32> to vector<2x1x32xf32>
      %185 = vector.shape_cast %184 : vector<2x1x32xf32> to vector<2x32xf32>
      %186 = arith.truncf %185 : vector<2x32xf32> to vector<2x32xbf16>
      %c0_75 = arith.constant 0 : index
      %c0_76 = arith.constant 0 : index
      %187 = vector.load %arg18[%c0_75, %c0_76] : memref<32x8xbf16, #tpu.memory_space<vmem>>, vector<32x8xbf16>
      %cst_77 = arith.constant dense<0.000000e+00> : vector<2x8xf32>
      %188 = tpu.matmul %186, %187, %cst_77 {dimension_numbers = #tpu.dot_dimension_numbers<[1], [0], [0], [1], [0, 0, 1, 1], [], []>} : vector<2x32xbf16>, vector<32x8xbf16>, vector<2x8xf32> -> vector<2x8xf32>
      %c0_78 = arith.constant 0 : index
      %c0_79 = arith.constant 0 : index
      %189 = vector.load %arg19[%c0_78, %c0_79] : memref<1x8xf32, #tpu.memory_space<vmem>>, vector<1x8xf32>
      %190 = vector.broadcast %189 : vector<1x8xf32> to vector<2x8xf32>
      %191 = arith.addf %188, %190 : vector<2x8xf32>
      %c0_80 = arith.constant 0 : index
      %c0_81 = arith.constant 0 : index
      %192 = vector.load %arg20[%c0_80, %c0_81] : memref<2x8xf32, #tpu.memory_space<vmem>>, vector<2x8xf32>
      tpu.vector_store %arg20[%c0_80, %c0_81], %191 {strides = array<i32>} : memref<2x8xf32, #tpu.memory_space<vmem>>, vector<2x8xf32>,
    } else {
    }
    return
  }
  func.func @transform_0(%arg0: i32, %arg1: i32) -> (i32, i32, i32) {
    %c0_i32 = arith.constant 0 : i32
    %c0_i32_0 = arith.constant 0 : i32
    %c0_i32_1 = arith.constant 0 : i32
    return %arg0, %c0_i32, %c0_i32_0 : i32, i32, i32
  }
  func.func @transform_1(%arg0: i32, %arg1: i32) -> (i32, i32) {
    %c0_i32 = arith.constant 0 : i32
    %c0_i32_0 = arith.constant 0 : i32
    %c0_i32_1 = arith.constant 0 : i32
    return %c0_i32, %c0_i32_0 : i32, i32
  }
  func.func @transform_2(%arg0: i32, %arg1: i32) -> (i32, i32) {
    %c0_i32 = arith.constant 0 : i32
    %c0_i32_0 = arith.constant 0 : i32
    %c0_i32_1 = arith.constant 0 : i32
    return %c0_i32, %c0_i32_0 : i32, i32
  }
  func.func @transform_3(%arg0: i32, %arg1: i32) -> (i32, i32) {
    %c0_i32 = arith.constant 0 : i32
    %c0_i32_0 = arith.constant 0 : i32
    %c0_i32_1 = arith.constant 0 : i32
    return %c0_i32, %c0_i32_0 : i32, i32
  }
  func.func @transform_4(%arg0: i32, %arg1: i32) -> (i32, i32, i32) {
    %c0_i32 = arith.constant 0 : i32
    %c0_i32_0 = arith.constant 0 : i32
    %c0_i32_1 = arith.constant 0 : i32
    return %arg1, %c0_i32, %c0_i32_0 : i32, i32, i32
  }
  func.func @transform_5(%arg0: i32, %arg1: i32) -> (i32, i32, i32) {
    %c0_i32 = arith.constant 0 : i32
    %c0_i32_0 = arith.constant 0 : i32
    %c0_i32_1 = arith.constant 0 : i32
    return %arg1, %c0_i32, %c0_i32_0 : i32, i32, i32
  }
  func.func @transform_6(%arg0: i32, %arg1: i32) -> (i32, i32, i32) {
    %c0_i32 = arith.constant 0 : i32
    %c0_i32_0 = arith.constant 0 : i32
    %c0_i32_1 = arith.constant 0 : i32
    return %arg1, %c0_i32, %c0_i32_0 : i32, i32, i32
  }
  func.func @transform_7(%arg0: i32, %arg1: i32) -> (i32, i32, i32) {
    %c0_i32 = arith.constant 0 : i32
    %c0_i32_0 = arith.constant 0 : i32
    %c0_i32_1 = arith.constant 0 : i32
    return %arg1, %c0_i32, %c0_i32_0 : i32, i32, i32
  }
  func.func @transform_8(%arg0: i32, %arg1: i32) -> (i32, i32, i32) {
    %c0_i32 = arith.constant 0 : i32
    %c0_i32_0 = arith.constant 0 : i32
    %c0_i32_1 = arith.constant 0 : i32
    return %arg1, %c0_i32, %c0_i32_0 : i32, i32, i32
  }
  func.func @transform_9(%arg0: i32, %arg1: i32) -> (i32, i32, i32) {
    %c0_i32 = arith.constant 0 : i32
    %c0_i32_0 = arith.constant 0 : i32
    %c0_i32_1 = arith.constant 0 : i32
    return %arg1, %c0_i32, %c0_i32_0 : i32, i32, i32
  }
  func.func @transform_10(%arg0: i32, %arg1: i32) -> (i32, i32, i32) {
    %c0_i32 = arith.constant 0 : i32
    %c0_i32_0 = arith.constant 0 : i32
    %c0_i32_1 = arith.constant 0 : i32
    return %arg1, %c0_i32, %c0_i32_0 : i32, i32, i32
  }
  func.func @transform_11(%arg0: i32, %arg1: i32) -> (i32, i32, i32) {
    %c0_i32 = arith.constant 0 : i32
    %c0_i32_0 = arith.constant 0 : i32
    %c0_i32_1 = arith.constant 0 : i32
    return %arg1, %c0_i32, %c0_i32_0 : i32, i32, i32
  }
  func.func @transform_12(%arg0: i32, %arg1: i32) -> (i32, i32, i32) {
    %c0_i32 = arith.constant 0 : i32
    %c0_i32_0 = arith.constant 0 : i32
    %c0_i32_1 = arith.constant 0 : i32
    return %arg1, %c0_i32, %c0_i32_0 : i32, i32, i32
  }
  func.func @transform_13(%arg0: i32, %arg1: i32) -> (i32, i32, i32) {
    %c0_i32 = arith.constant 0 : i32
    %c0_i32_0 = arith.constant 0 : i32
    %c0_i32_1 = arith.constant 0 : i32
    return %arg1, %c0_i32, %c0_i32_0 : i32, i32, i32
  }
  func.func @transform_14(%arg0: i32, %arg1: i32) -> (i32, i32, i32) {
    %c0_i32 = arith.constant 0 : i32
    %c0_i32_0 = arith.constant 0 : i32
    %c0_i32_1 = arith.constant 0 : i32
    return %arg1, %c0_i32, %c0_i32_0 : i32, i32, i32
  }
  func.func @transform_15(%arg0: i32, %arg1: i32) -> (i32, i32, i32) {
    %c0_i32 = arith.constant 0 : i32
    %c0_i32_0 = arith.constant 0 : i32
    %c0_i32_1 = arith.constant 0 : i32
    return %arg1, %c0_i32, %c0_i32_0 : i32, i32, i32
  }
  func.func @transform_16(%arg0: i32, %arg1: i32) -> (i32, i32) {
    %c0_i32 = arith.constant 0 : i32
    %c0_i32_0 = arith.constant 0 : i32
    %c0_i32_1 = arith.constant 0 : i32
    return %c0_i32, %c0_i32_0 : i32, i32
  }
  func.func @transform_17(%arg0: i32, %arg1: i32) -> (i32, i32) {
    %c0_i32 = arith.constant 0 : i32
    %c0_i32_0 = arith.constant 0 : i32
    %c0_i32_1 = arith.constant 0 : i32
    return %c0_i32, %c0_i32_0 : i32, i32
  }
  func.func @transform_18(%arg0: i32, %arg1: i32) -> (i32, i32) {
    %c0_i32 = arith.constant 0 : i32
    %c0_i32_0 = arith.constant 0 : i32
    return %arg0, %c0_i32 : i32, i32
  }
}

</mosaic_0001>

<bundles_post_ra>
// kernel: tpu_custom_call.1
= control target key start
LH: loop header
LB: loop body
LE: loop exit
PB: predicated region body
PF: predicated region fallthrough
CT: control target
= control target key end

     0   :  { %s3862_s0 = inlined_call_operand.vmem [shape: f32[2,8,16], index: 0, kind: input, shape index: {}]   ;;  %s3863_s1 = inlined_call_operand.hbm [shape: bf16[16,32], index: 1, kind: input, shape index: {}]   ;;  %s3864_s2 = inlined_call_operand.vmem [shape: f32[1,32], index: 2, kind: input, shape index: {}]   ;;  %s3865_s3 = inlined_call_operand.vmem [shape: f32[8,32], index: 3, kind: input, shape index: {}]   ;;  %s3866_s4 = inlined_call_operand.vmem [shape: bf16[2,32,96], index: 4, kind: input, shape index: {}]   ;;  %s3867_s5 = inlined_call_operand.vmem [shape: f32[2,1,96], index: 5, kind: input, shape index: {}]   ;;  %s3868_s6 = inlined_call_operand.vmem [shape: bf16[2,32,32], index: 6, kind: input, shape index: {}]   ;;  %s3869_s7 = inlined_call_operand.vmem [shape: f32[2,1,32], index: 7, kind: input, shape index: {}]   ;;  %s3870_s8 = inlined_call_operand.hbm [shape: f32[2,1,32], index: 8, kind: input, shape index: {}]   ;;  %s3871_s9 = inlined_call_operand.hbm [shape: f32[2,1,32], index: 9, kind: input, shape index: {}]   ;;  %s3872_s10 = inlined_call_operand.vmem [shape: bf16[2,32,64], index: 10, kind: input, shape index: {}]   ;;  %s3873_s11 = inlined_call_operand.hbm [shape: f32[2,1,64], index: 11, kind: input, shape index: {}]   ;;  %s3874_s12 = inlined_call_operand.vmem [shape: bf16[2,64,32], index: 12, kind: input, shape index: {}]   ;;  %s3875_s13 = inlined_call_operand.vmem [shape: f32[2,1,32], index: 13, kind: input, shape index: {}]   ;;  %s3876_s14 = inlined_call_operand.vmem [shape: f32[2,1,32], index: 14, kind: input, shape index: {}]   ;;  %s3877_s15 = inlined_call_operand.vmem [shape: f32[2,1,32], index: 15, kind: input, shape index: {}]   ;;  %s3878_s16 = inlined_call_operand.vmem [shape: bf16[32,8], index: 16, kind: input, shape index: {}]   ;;  %s3879_s17 = inlined_call_operand.vmem [shape: f32[1,8], index: 17, kind: input, shape index: {}]   ;;  %s3880_s18 = inlined_call_operand.hbm [shape: f32[2,8], index: 18, kind: output, shape index: {}]  }
   0x1   :  { %3897 = sst [smem:[#allocation21_spill]] %s3862_s0 }
   0x2   :  { %3898 = sst [smem:[#allocation22_spill]] %s3863_s1 }
   0x3   :  { %3899 = sst [smem:[#allocation23_spill]] %s3864_s2 }
   0x4   :  { %3900 = sst [smem:[#allocation24_spill]] %s3865_s3 }
   0x5   :  { %3901 = sst [smem:[#allocation25_spill]] %s3866_s4 }
   0x6   :  { %3902 = sst [smem:[#allocation26_spill]] %s3868_s6 }
   0x7   :  { %3903 = sst [smem:[#allocation27_spill]] %s3870_s8 }
   0x8   :  { %3904 = sst [smem:[#allocation28_spill]] %s3871_s9 }
   0x9   :  { %3905 = sst [smem:[#allocation29_spill]] %s3872_s10 }
   0xa   :  { %3906 = sst [smem:[#allocation30_spill]] %s3874_s12 }
   0xb   :  { %3907 = sst [smem:[#allocation31_spill]] %s3875_s13 }
   0xc   :  { %3908 = sst [smem:[#allocation32_spill]] %s3876_s14 }
   0xd   :  { %3909 = sst [smem:[#allocation33_spill]] %s3877_s15 }
   0xe   :  { %3910 = sst [smem:[#allocation34_spill]] %s3878_s16 }
   0xf   :  { %3911 = sst [smem:[#allocation35_spill]] %s3879_s17 }
  0x10   :  { %3912 = sst [smem:[#allocation36_spill]] %s3880_s18 }
  0x11   :  { %23 = vsyncpa [#allocation4], 0 }
  0x12   :  { %24 = vsyncpa [#allocation7], 0 }
  0x13   :  { %26 = vsyncpa [#allocation7 + $0x1], 0 }
  0x14   :  { %27 = vsyncpa [#allocation10], 0 }
  0x15   :  { %29 = vsyncpa [#allocation10 + $0x1], 0 }
  0x16   :  { %30 = vsyncpa [#allocation5], 0  ;;  %s3310_s27 = smov 0   ;;  %s3312_s28 = smov 0  }
  0x17   :  { %s3314_s29 = smov 0   ;;  %s3316_s30 = smov 0  }
  0x18   :  { %s3318_s0 = smov 0   ;;  %s3320_s19 = smov 0  }
  0x19 LB: > { %3913 = sst [smem:[#allocation16_spill]] %s3174_s29  ;;  %s45_s1 = sadd.s32 1, %s3182_s0  ;;  %s3186_s19 = sphi %s3320_s19, %s36_s19   ;;  %s3182_s0 = sphi %s3318_s0, %s3958_s0   ;;  %s3178_s30 = sphi %s3316_s30, %s3957_s30   ;;  %s3174_s29 = sphi %s3314_s29, %s3956_s29   ;;  %s3170_s28 = sphi %s3312_s28, %s3960_s28   ;;  %s3166_s27 = sphi %s3310_s27, %s3959_s27  }
  0x1a   : > { %3914 = sst [smem:[#allocation17_spill]] %s3182_s0  ;;  %s248_s20 = sadd.s32 1, %s3174_s29 }
  0x1b   : > { %3915 = sst [smem:[#allocation18_spill]] %s3186_s19  ;;  %p46_p0 = scmp.ge.s32.totalorder %s45_s1, 2 }
  0x1c   : > { %p255_p1 = scmp.ne.s32.totalorder %s3174_s29, %s3170_s28  ;;  %p256_p2 = scmp.eq.s32.totalorder %s3186_s19, 0 }
  0x1d   : > { %s3962_s1 = smov (%p46_p0, %s45_s1), 0  ;;  %p2836_p4 = scmp.lt.s32.totalorder %s3186_s19, 2 }
  0x1e   : > { %3916 = sst [smem:[#allocation19_spill]] %s3962_s1  ;;  %p257_p3 = por %p256_p2, %p255_p1 }
  0x1f   : > { %s245_s21 = ssub.s32 %s3182_s0, %s3962_s1  ;;  %s597_s22 = sand.u32 1, %s3186_s19  }
  0x20   : > { %p246_p5 = scmp.eq.s32.totalorder %s245_s21, 0  ;;  %s3352_s2 = sand.u32 1, %s3174_s29  }
  0x21   : > { %s3355_s23 = sshll.u32 %s3182_s0, 4  ;;  %s3918_s8 = sld [smem:[#allocation27_spill]] }
  0x22   : > { %s3358_s24 = scalar_select %p246_p5, %s3174_s29, %s248_s20  }
  0x23   : > { %s600_s1 = scalar_lea.vmem [#allocation6], %s3352_s2  ;;  %p3367_p6 = pnand %p2836_p4, %p257_p3 }
  0x24   : > { %3917 = sst [smem:[#allocation20_spill]] %s3358_s24  ;;  %s607_s17 = sshll.u32 %s600_s1, 4  ;;  %s3371_s17 = int_to_ptr.vmem [resolvable:$true] %s607_s17 }
  0x25   : > { %s3919_s21 = scalar_select %p3367_p6, 1, 0 }
  0x26   : > { %s3373_s20 = scalar_lea.sflag [#allocation7], %s597_s22  ;;  %p3379_p8 = pneg %p3367_p6 }
  0x27   : > { %s3364_s18 = scalar_lea.hbm %s3918_s8, %s3355_s23  ;;  %s2985_s24 = scalar_lea.hbm %s3918_s8, 32 }
  0x28   : > { %s2980_s0 = scalar_lea.hbm %s3364_s18, 16  ;;  %p2986_p11 = scmp.lt.u32.totalorder %s3364_s18, %s3918_s8 }
  0x29   : > { %p2981_p7 = scmp.ne.s32.totalorder %s3364_s18, %s2980_s0  ;;  %p2987_p12 = scmp.lt.u32.totalorder %s2985_s24, %s2980_s0 }
  0x2a   : > { %s3920_s25 = scalar_select %p3379_p8, 1, 0 }
  0x2b   : > { %p2983_p9 = pnand %p3379_p8, %p2981_p7  ;;  %p2988_p13 = por %p2987_p12, %p2986_p11 }
  0x2c   : > { %p2989_p0 = scmp.lt.u32.totalorder %s2980_s0, %s3364_s18 }
  0x2d   : > { %p2984_p10 = pneg %p2983_p9 }
  0x2e   : > { %p2990_p1 = por %p2989_p0, %p2988_p13 }
  0x30   : > { %p2991_p2 = pnand %p2990_p1, %p2984_p10 }
  0x32   : > { %2994 = shalt.err (!%p2991_p2)
}
  0x33   : > { %s2995_s22 = scalar_lea.vmem %s3371_s17, 16  ;;  %s3188_s1 = smov [#allocation6]  }
  0x34   : > { %p2996_p3 = scmp.ne.s32.totalorder %s3371_s17, %s2995_s22  ;;  %s3000_s26 = sshll.u32 %s3188_s1, 4  ;;  %s3001_s26 = int_to_ptr.vmem [resolvable:$false] %s3000_s26 }
  0x35   : > { %s3002_s16 = scalar_lea.vmem %s3001_s26, 32  ;;  %p3003_p7 = scmp.lt.s32.totalorder %s3371_s17, %s3001_s26 }
  0x36   : > { %p2998_p4 = pnand %p2996_p3, %p3379_p8  ;;  %p3004_p9 = scmp.lt.s32.totalorder %s3002_s16, %s2995_s22 }
  0x38   : > { %p2999_p5 = pneg %p2998_p4  ;;  %p3005_p11 = por %p3004_p9, %p3003_p7 }
  0x3a   : > { %p3006_p12 = pnand %p3005_p11, %p2999_p5 }
  0x3c   : > { %3009 = shalt.err (!%p3006_p12)
}
  0x3d   : > { %2828 = dma.hbm_to_vmem [thread:$0]  (!%p3367_p6), %s3364_s18, 16, %s3371_s17, %s3373_s20  }
  0x3e   : > { %s3404_s29 = sadd.s32 4294967295, %s3186_s19   ;;  %p261_p10 = scmp.ne.s32.totalorder %s3170_s28, %s3166_s27 }
  0x3f   : > { %p3889_p13 = scmp.eq.s32.totalorder %s3404_s29, 0  ;;  %p2538_p0 = scmp.ge.s32.totalorder %s3186_s19, 1 }
  0x40   : > { %p522_p1 = scmp.lt.s32.totalorder %s3186_s19, 3  ;;  %s3189_s17 = smov [#allocation3]  }
  0x41   : > { %p3413_p2 = por %p3889_p13, %p261_p10  ;;  %s543_s18 = sshll.u32 %s3189_s17, 4  ;;  %s3421_s18 = int_to_ptr.vmem [resolvable:$true] %s543_s18 }
  0x42   : > { %p3417_p3 = pnand %p2538_p0, %p522_p1  ;;  %s3923_s9 = sld [smem:[#allocation28_spill]] }
  0x43   : > { %s3921_s0 = scalar_select %p3413_p2, 1, 0 }
  0x44   : > { %s3922_s24 = scalar_select %p3417_p3, 1, 0 }
  0x45   : > { %p2821_p4 = pneg %p3417_p3  ;;  %s617_s16 = scalar_lea.vmem [#allocation8], %s3352_s2 }
  0x46   : > { %s624_s8 = sshll.u32 %s617_s16, 4  ;;  %s3925_s3 = sld [smem:[#allocation22_spill]]  ;;  %s3438_s8 = int_to_ptr.vmem [resolvable:$true] %s624_s8 }
  0x47   : > { %p3433_p5 = pnand %p2821_p4, %p3889_p13 }
  0x48   : > { %s3429_s1 = scalar_lea.hbm %s3923_s9, %s3355_s23 }
  0x49   : > { %p3012_p9 = pneg %p3433_p5 }
  0x4c   : > { %s3010_s15 = scalar_lea.hbm %s3925_s3, 128 }
  0x4d   : > { %p3011_p7 = scmp.ne.s32.totalorder %s3925_s3, %s3010_s15  ;;  %p3017_p10 = scmp.lt.u32.totalorder %s3010_s15, %s3925_s3 }
  0x4f   : > { %p3013_p11 = pnand %p3012_p9, %p3011_p7 }
  0x51   : > { %p3014_p12 = pneg %p3013_p11 }
  0x53   : > { %p3019_p0 = pnand %p3017_p10, %p3014_p12 }
  0x55   : > { %3022 = shalt.err (!%p3019_p0)
}
  0x56   : > { %s3023_s16 = scalar_lea.vmem %s3421_s18, 128  ;;  %p3031_p2 = scmp.lt.s32.totalorder %s3421_s18, %s3421_s18 }
  0x57   : > { %p3024_p1 = scmp.ne.s32.totalorder %s3421_s18, %s3023_s16  ;;  %p3032_p3 = scmp.lt.s32.totalorder %s3023_s16, %s3023_s16 }
  0x59   : > { %p3026_p4 = pnand %p3024_p1, %p3012_p9  ;;  %p3033_p6 = por %p3032_p3, %p3031_p2 }
  0x5b   : > { %p3027_p13 = pneg %p3026_p4 }
  0x5d   : > { %p3034_p8 = pnand %p3033_p6, %p3027_p13 }
  0x5f   : > { %3037 = shalt.err (!%p3034_p8)
}
  0x60   : > { %s3190_s12 = smov 64   ;;  %s3191_s14 = smov 4  }
  0x61   : > { %2824 = dma.hbm_to_vmem [thread:$0]  (!%p3433_p5), %s3925_s3, 128, %s3421_s18, [#allocation4], %s3190_s12, %s3190_s12, %s3191_s14  }
  0x62   : > { %s3038_s17 = scalar_lea.hbm %s3429_s1, 16  ;;  %p3926_p9 = scmp.ne.s32.totalorder %s3920_s25, 0 }
  0x63   : > { %p3039_p7 = scmp.ne.s32.totalorder %s3429_s1, %s3038_s17  ;;  %s3043_s16 = scalar_lea.hbm %s3923_s9, 32 }
  0x64   : > { %p3044_p8 = scmp.lt.u32.totalorder %s3429_s1, %s3923_s9  ;;  %p3045_p13 = scmp.lt.u32.totalorder %s3043_s16, %s3038_s17 }
  0x65   : > { %p3041_p2 = pnand %p3039_p7, %p3926_p9  ;;  %p3047_p11 = scmp.lt.u32.totalorder %s3038_s17, %s3429_s1 }
  0x66   : > { %p3046_p3 = por %p3045_p13, %p3044_p8 }
  0x67   : > { %p3042_p6 = pneg %p3041_p2 }
  0x68   : > { %p3048_p12 = por %p3047_p11, %p3046_p3 }
  0x6a   : > { %p3049_p10 = pnand %p3048_p12, %p3042_p6 }
  0x6c   : > { %3052 = shalt.err (!%p3049_p10)
}
  0x6d   : > { %s3053_s18 = scalar_lea.vmem %s3438_s8, 16  ;;  %s3192_s26 = smov [#allocation8]  }
  0x6e   : > { %p3054_p5 = scmp.ne.s32.totalorder %s3438_s8, %s3053_s18  ;;  %s3058_s12 = sshll.u32 %s3192_s26, 4  ;;  %s3059_s12 = int_to_ptr.vmem [resolvable:$false] %s3058_s12 }
  0x6f   : > { %s3060_s10 = scalar_lea.vmem %s3059_s12, 32  ;;  %p3061_p4 = scmp.lt.s32.totalorder %s3438_s8, %s3059_s12 }
  0x70   : > { %p3056_p0 = pnand %p3054_p5, %p3926_p9  ;;  %p3062_p7 = scmp.lt.s32.totalorder %s3060_s10, %s3053_s18 }
  0x72   : > { %p3057_p1 = pneg %p3056_p0  ;;  %p3063_p2 = por %p3062_p7, %p3061_p4 }
  0x74   : > { %p3064_p8 = pnand %p3063_p2, %p3057_p1 }
  0x76   : > { %3067 = shalt.err (!%p3064_p8)
}
  0x77   : > { %p3927_p6 = scmp.ne.s32.totalorder %s3919_s21, 0  ;;  %s3487_s15 = scalar_lea.hbm %s3873_s11, %s3355_s23 }
  0x78   : > { %s642_s19 = scalar_lea.vmem [#allocation9], %s3352_s2  ;;  %s640_s27 = scalar_lea.sflag [#allocation10], %s3352_s2 }
  0x79   : > { %2831 = dma.hbm_to_vmem [thread:$0]  (!%p3927_p6), %s3429_s1, 16, %s3438_s8, %s3373_s20  }
  0x7a   : > { %s649_s17 = sshll.u32 %s642_s19, 4  ;;  %s3068_s22 = scalar_lea.hbm %s3487_s15, 16  ;;  %s650_s17 = int_to_ptr.vmem [resolvable:$true] %s649_s17 }
  0x7b   : > { %p3069_p13 = scmp.ne.s32.totalorder %s3487_s15, %s3068_s22  ;;  %s3073_s20 = scalar_lea.hbm %s3873_s11, 32 }
  0x7c   : > { %p3074_p12 = scmp.lt.u32.totalorder %s3487_s15, %s3873_s11  ;;  %p3075_p10 = scmp.lt.u32.totalorder %s3073_s20, %s3068_s22 }
  0x7d   : > { %p3071_p3 = pnand %p3069_p13, %p3926_p9  ;;  %p3077_p0 = scmp.lt.u32.totalorder %s3068_s22, %s3487_s15 }
  0x7e   : > { %p3076_p5 = por %p3075_p10, %p3074_p12 }
  0x7f   : > { %p3072_p11 = pneg %p3071_p3 }
  0x80   : > { %p3078_p1 = por %p3077_p0, %p3076_p5 }
  0x82   : > { %p3079_p4 = pnand %p3078_p1, %p3072_p11 }
  0x84   : > { %3082 = shalt.err (!%p3079_p4)
}
  0x85   : > { %s3083_s2 = scalar_lea.vmem %s650_s17, 16  ;;  %s3193_s18 = smov [#allocation9]  }
  0x86   : > { %p3084_p7 = scmp.ne.s32.totalorder %s650_s17, %s3083_s2  ;;  %s3088_s26 = sshll.u32 %s3193_s18, 4  ;;  %s3089_s26 = int_to_ptr.vmem [resolvable:$false] %s3088_s26 }
  0x87   : > { %s3090_s12 = scalar_lea.vmem %s3089_s26, 32  ;;  %p3091_p13 = scmp.lt.s32.totalorder %s650_s17, %s3089_s26 }
  0x88   : > { %p3086_p2 = pnand %p3084_p7, %p3926_p9  ;;  %p3092_p3 = scmp.lt.s32.totalorder %s3090_s12, %s3083_s2 }
  0x8a   : > { %p3087_p8 = pneg %p3086_p2  ;;  %p3093_p6 = por %p3092_p3, %p3091_p13 }
  0x8c   : > { %p3094_p10 = pnand %p3093_p6, %p3087_p8 }
  0x8e   : > { %3097 = shalt.err (!%p3094_p10)
}
  0x8f   : > { %p3928_p12 = scmp.ne.s32.totalorder %s3919_s21, 0  ;;  %p3929_p11 = scmp.ne.s32.totalorder %s3922_s24, 0 }
  0x90   : > { %p3930_p5 = scmp.eq.s32.totalorder (!%p3929_p11), %s3404_s29, 0 }
  0x91   : > { %2834 = dma.hbm_to_vmem [thread:$0]  (!%p3928_p12), %s3487_s15, 16, %s650_s17, %s640_s27  }
  0x92   : > { %684 = sbr.rel (%p3929_p11) target bundleno = 4763 (0x129b), region = 92 }
  0x99   : > { %3149 = dma.done.wait (%p3930_p5), [#allocation4], 128   ;;  %p3931_p9 = pmov %p3930_p5 }
  0x9a   : > { %s690_s25 = sand.u32 1, %s3404_s29   ;;  %s3516_s10 = sand.u32 1, %s3170_s28  }
  0x9b   : > { %3151 = vsyncadd (%p3931_p9), [#allocation4], 4294967168  ;;  %s691_s13 = scalar_lea.sflag [#allocation7], %s690_s25  ;;  %p3932_p6 = scmp.ne.s32.totalorder %s3921_s0, 0 }
  0x9d   : > { %3153 = dma.done.wait (%p3932_p6), %s691_s13, 32  }
  0x9e   : > { %3155 = vsyncadd (%p3932_p6), %s691_s13, 4294967264  ;;  %s707_s14 = scalar_lea.sflag [#allocation10], %s3516_s10 }
  0x9f   : > { %3157 = dma.done.wait (%p3932_p6), %s707_s14, 16  }
  0xa0   : > { %3159 = vsyncadd (%p3932_p6), %s707_s14, 4294967280  ;;  %p810_p0 = scmp.lt.s32.totalorder %s3178_s30, 1  ;;  %s3933_s4 = sld [smem:[#allocation25_spill]] }
  0xa1   : > { %s3934_s6 = sld [smem:[#allocation26_spill]]  ;;  %s3935_s14 = sld [smem:[#allocation29_spill]] }
  0xa2   : > { %s3532_s19 = scalar_select %p810_p0, %s3178_s30, 1 }
  0xa3   : > { %s3936_s8 = sld [smem:[#allocation31_spill]]  ;;  %s3937_s3 = sld [smem:[#allocation30_spill]] }
  0xa4   : > { %s2606_s17 = sshll.u32 %s3532_s19, 4  ;;  %s2609_s27 = sshll.u32 %s3532_s19, 5 }
  0xa5   : > { %s3939_s9 = sld [smem:[#allocation33_spill]]  ;;  %p2555_p1 = scmp.ne.s32.totalorder %s3178_s30, 0 }
  0xa6   : > { %s3542_s20 = scalar_lea.vmem %s3933_s4, %s2606_s17  ;;  %v2912_v0 = vld [vmem:[#allocation3] sm:$0xff] (!%p2555_p1)   ;;  %v3194_v1 = vmov (!%p2555_p1), 0.0   ;;  %s3940_s13 = sld [smem:[#allocation21_spill]] (!%p2555_p1)  ;;  %vm3195_vm0 = vmmov (!%p2555_p1), 0   ;;  %vm868_vm1 = vcmask (!%p2555_p1), 130048   ;;  %vm916_vm2 = vcmask (!%p2555_p1), 261120  }
  0xa7   : > { %s3547_s2 = scalar_lea.vmem %s3934_s6, %s2606_s17  ;;  %s3556_s15 = scalar_lea.vmem %s3935_s14, %s2606_s17  ;;  %2661 = vmatprep.subr.bf16.mxu0 (!%p2555_p1), %v3194_v1  ;;  %2663 = vmatprep.mubr.msk.bf16.mxu0 (!%p2555_p1), %vm3195_vm0, %v3194_v1 }
  0xa8   : > { %s3938_s6 = sld [smem:[#allocation32_spill]]  ;;  %849 = sbr.rel (%p2555_p1) target bundleno = 394 (0x18a), region = 112  ;;  %2662 = vmatpush3.bf16.msra.mxu0 (!%p2555_p1), %v2912_v0 }
  0xa9   : > { %s838_s0 = scalar_lea.vmem %s3936_s8, %s3532_s19  ;;  %s3566_s1 = scalar_lea.vmem %s3937_s3, %s2609_s27 }
  0xaa   : > { %s3942_s14 = sld [smem:[#allocation24_spill]] (!%p2555_p1) }
  0xab   : > { %s844_s25 = scalar_lea.vmem %s3939_s9, %s3532_s19  ;;  %s3941_s9 = sld [smem:[#allocation23_spill]] (!%p2555_p1) }
  0xac   : > { %v850_v2 = vld [vmem:[%s3940_s13] sm:$0xff] (!%p2555_p1)  ;;  %v851_v3 = vld [vmem:[%s3940_s13 + $0x8] sm:$0xff] (!%p2555_p1) }
  0xad   : > { %v852_v4 = vpack.c.bf16 (!%p2555_p1), %v851_v3, %v850_v2 }
  0xae   : > { %s841_s18 = scalar_lea.vmem %s3938_s6, %s3532_s19 }
  0xaf   : > { %2664 = vmatmul.mubr.msk.bf16.vlgmr.msra.gmra.mrb[0].mxu0 %vm868_vm1, %v852_v4 }
  0xb0   : > { %v913_v7 = vld [vmem:[%s3942_s14] sm:$0xff] }
  0xb1   : > { %v2556_v5 = vld [vmem:[%s3941_s9] ss:$0 sm:$0xff] }
 0x182   : > { %v906_v6 = vpop.f32.mrb[0].mxu0 }
 0x183   : > { %v907_v8 = vadd.f32 %v2556_v5, %v906_v6  ;;  %v2665_v9 = vpop.f32.mrb[1].mxu0 }
 0x184   : > { %v909_v10 = vpop.f32.mrb[2].mxu0 }
 0x185   : > { %v914_v11 = vadd.f32 %v913_v7, %v907_v8  ;;  %v910_v12 = vadd.f32 %v2556_v5, %v909_v10  ;;  %v2666_v13 = vpop.f32.mrb[3].mxu0 }
 0x187   : > { %917 = vst.msk [vmem:[#allocation2] sm:$0xff] %vm916_vm2, %v914_v11  ;;  %v915_v14 = vadd.f32 %v913_v7, %v910_v12 }
 0x189   : > { %918 = vst.msk [vmem:[#allocation2 + $0x8] sm:$0xff] %vm916_vm2, %v915_v14 }
 0x18a PF: > { %v2928_v15 = vld [vmem:[%s3542_s20] sm:$0xff]   ;;  %v3196_v16 = vmov 0.0   ;;  %v2929_v17 = vld [vmem:[%s3542_s20 + $0x8] sm:$0xff]   ;;  %vm3197_vm3 = vmmov 0   ;;  %vm945_vm4 = vcmask 261120   ;;  %s3943_s22 = scalar_lea.vmem %s3867_s5, %s3532_s19  ;;  %s3198_s8 = smov 96  }
 0x18b   : > { %2667 = vmatprep.subr.bf16.mxu0 %v3196_v16  ;;  %2675 = vmatprep.subr.bf16.mxu1 %v3196_v16  ;;  %v2559_v21 = vld [vmem:[%s3943_s22] ss:$0 sm:$0xff]  ;;  %vm995_vm5 = vcmask 64512   ;;  %s3199_s23 = smov 64   ;;  %s3200_s26 = smov 88   ;;  %vm1122_vm6 = vcmask 1043456  }
 0x18c   : > { %2668 = vmatpush3.bf16.msra.mxu0 %v2928_v15  ;;  %2671 = vmatprep.mubr.msk.bf16.mxu0 %vm3197_vm3, %v3196_v16  ;;  %s3201_s24 = smov 120   ;;  %s3202_s17 = smov 56   ;;  %vm1906_vm7 = vcmask 130048   ;;  %vm1909_vm8 = vcmask 195584   ;;  %vm2137_vm9 = vcmask 523264  }
 0x18d   : > { %2669 = vmatprep.subr.bf16.mxu0 %v3196_v16  ;;  %2677 = vmatprep.mubr.msk.bf16.mxu1 %vm3197_vm3, %v3196_v16  ;;  %s3203_s3 = smov 80   ;;  %s3204_s21 = smov 112  }
 0x18e   : > { %v3595_v18 = vld [vmem:[#allocation2] sm:$0xff]  ;;  %s3205_s4 = smov 48   ;;  %s3206_s6 = smov 72  }
 0x18f   : > { %s3207_s9 = smov 104   ;;  %s3208_s16 = smov 40  }
 0x190   : > { %v3597_v19 = vld [vmem:[#allocation2 + $0x8] sm:$0xff]  ;;  %2670 = vmatpush3.bf16.msra.mxu0 %v2929_v17  ;;  %s3209_s12 = smov 8   ;;  %s3210_s14 = smov 16  }
 0x191   : > { %v921_v20 = vpack.c.bf16 %v3597_v19, %v3595_v18  ;;  %2681 = vmatprep.subr.bf16.mxu0 %v3196_v16  ;;  %s3211_s20 = smov 24   ;;  %s3944_s22 = scalar_lea.vmem %s3869_s7, %s3532_s19 }
 0x192   : > { %p2597_p4 = scmp.ne.s32.totalorder %s3178_s30, 1 }
 0x193   : > { %2672 = vmatmul.mubr.msk.bf16.vlgmr.msra.gmra.mrb[0].mxu0 %vm945_vm4, %v921_v20  ;;  %vm3213_vm10 = vmmov (!%p2597_p4), 0   ;;  %vm2253_vm11 = vcmask (!%p2597_p4), 1041409   ;;  %vm2311_vm12 = vcmask (!%p2597_p4), 58368  }
 0x194   : > { %2683 = vmatprep.mubr.msk.bf16.mxu0 %vm3197_vm3, %v3196_v16 }
 0x266   : > { %v983_v22 = vpop.f32.mrb[0].mxu0 }
 0x267   : > { %v984_v23 = vadd.f32 %v2559_v21, %v983_v22  ;;  %v2673_v24 = vpop.f32.mrb[1].mxu0 }
 0x268   : > { %v986_v25 = vpop.f32.mrb[2].mxu0 }
 0x269   : > { %v3613_v26 = vpack.c.bf16 %v984_v23, %v984_v23  ;;  %v987_v27 = vadd.f32 %v2559_v21, %v986_v25  ;;  %v2674_v28 = vpop.f32.mrb[3].mxu0 }
 0x26b   : > { %993 = vrot.lane.b32.xlu0 %v3613_v26, %s3198_s8  ;;  %v3616_v29 = vpack.c.bf16 %v987_v27, %v987_v27 }
 0x26f   : > { %1043 = vrot.lane.b32.xlu0 %v3616_v29, %s3198_s8  ;;  %s3946_s8 = scalar_lea.vmem [#allocation8], %s3516_s10 }
 0x2dd   : > { %v994_v30 = vpop.permute.xlu0 %993 }
 0x2de   : > { %v1000_v31 = vsel %vm995_vm5, %v994_v30, 0 }
 0x2df   : > { %2676 = vmatpush3.bf16.xpose.msra.mxu1 %v1000_v31 }
 0x2e0   : > { %2687 = vmatprep.subr.bf16.mxu1 %v3196_v16 }
 0x2e1   : > { %v1044_v32 = vpop.permute.xlu0 %1043 }
 0x2e2   : > { %v1049_v33 = vsel %vm995_vm5, %v1044_v32, 0 }
 0x2e3   : > { %2682 = vmatpush3.bf16.xpose.msra.mxu0 %v1049_v33 }
 0x2e4   : > { %2693 = vmatprep.subr.bf16.mxu0 %v3196_v16 }
 0x2e6   : > { %2678 = vmatmul.mubr.msk.bf16.vlgmr.msra.gmra.mrb[0].mxu1 %vm995_vm5, %v3613_v26 }
 0x2e7   : > { %2689 = vmatprep.mubr.msk.bf16.mxu1 %vm3197_vm3, %v3196_v16 }
 0x2ea   : > { %2684 = vmatmul.mubr.msk.bf16.vlgmr.msra.gmra.mrb[4].mxu0 %vm995_vm5, %v3616_v29 }
 0x2eb   : > { %2695 = vmatprep.mubr.msk.bf16.mxu0 %vm3197_vm3, %v3196_v16 }
 0x3b9   : > { %v1036_v34 = vpop.f32.mrb[0].mxu1 }
 0x3ba   : > { %v1091_v35 = vmul.f32 0.35355338, %v1036_v34  ;;  %v2679_v36 = vpop.f32.mrb[1].mxu1 }
 0x3bb   : > { %v1039_v37 = vpop.f32.mrb[2].mxu1 }
 0x3bc   : > { %v2680_v38 = vpop.f32.mrb[3].mxu1  ;;  %v1093_v39 = vsel %vm995_vm5, %v1091_v35, -inf }
 0x3bd   : > { %1094 = vmax.xlane.f32.xlu1 %v1093_v39  ;;  %v1085_v40 = vpop.f32.mrb[4].mxu0 }
 0x3be   : > { %v1092_v41 = vmul.f32 0.35355338, %v1085_v40  ;;  %v2685_v42 = vpop.f32.mrb[5].mxu0 }
 0x3bf   : > { %v1088_v43 = vpop.f32.mrb[6].mxu0 }
 0x3c0   : > { %v2686_v44 = vpop.f32.mrb[7].mxu0  ;;  %v1096_v45 = vsel %vm995_vm5, %v1092_v41, -inf }
 0x3c1   : > { %1097 = vmax.xlane.f32.xlu1 %v1096_v45 }
 0x3d2   : > { %1117 = vrot.lane.b32.xlu1 %v3613_v26, %s3199_s23 }
 0x3d6   : > { %1166 = vrot.lane.b32.xlu1 %v3616_v29, %s3199_s23  ;;  %s3947_s23 = scalar_lea.vmem [#allocation9], %s3516_s10 }
 0x3da   : > { %1216 = vrot.lane.b32.xlu1 %v3613_v26, %s3200_s26 }
 0x44a   : > { %v1095_v46 = vpop.xlane.xlu1 %1094 }
 0x44b   : > { %v1099_v47 = vsub.f32 %v1091_v35, %v1095_v46 }
 0x44d   : > { %v1101_v48 = vmul.f32 1.442695, %v1099_v47 }
 0x44e   : > { %v1098_v49 = vpop.xlane.xlu1 %1097 }
 0x44f   : > { %2938 = vpow2.f32 %v1101_v48  ;;  %v1100_v50 = vsub.f32 %v1092_v41, %v1098_v49 }
 0x451   : > { %v1103_v51 = vmul.f32 1.442695, %v1100_v50 }
 0x452   : > { %v1118_v52 = vpop.permute.xlu1 %1117 }
 0x453   : > { %2940 = vpow2.f32 %v1103_v51  ;;  %v1124_v53 = vsel %vm1122_vm6, %v1118_v52, 0 }
 0x454   : > { %2688 = vmatpush3.bf16.msra.mxu1 %v1124_v53 }
 0x455   : > { %2699 = vmatprep.subr.bf16.mxu1 %v3196_v16 }
 0x456   : > { %v1167_v54 = vpop.permute.xlu1 %1166 }
 0x457   : > { %v1172_v55 = vsel %vm1122_vm6, %v1167_v54, 0 }
 0x458   : > { %2694 = vmatpush3.bf16.msra.mxu0 %v1172_v55 }
 0x459   : > { %v2939_v56 = vpop.eup %2938  ;;  %2705 = vmatprep.subr.bf16.mxu0 %v3196_v16 }
 0x45a   : > { %v1105_v57 = vsel %vm995_vm5, %v2939_v56, 0.0  ;;  %v1217_v60 = vpop.permute.xlu1 %1216 }
 0x45b   : > { %1106 = vadd.xlane.f32.xlu0 %v1105_v57  ;;  %v1222_v3 = vsel %vm995_vm5, %v1217_v60, 0 }
 0x45d   : > { %v2941_v58 = vpop.eup %2940 }
 0x45e   : > { %v1108_v59 = vsel %vm995_vm5, %v2941_v58, 0.0 }
 0x45f   : > { %1109 = vadd.xlane.f32.xlu1 %v1108_v59 }
 0x470   : > { %1266 = vrot.lane.b32.xlu1 %v3616_v29, %s3200_s26 }
 0x471   : > { %1214 = vrot.lane.b32.xlu0 %v3613_v26, %s3201_s24 }
 0x474   : > { %1264 = vrot.lane.b32.xlu1 %v3616_v29, %s3201_s24 }
 0x4e8   : > { %v1107_v61 = vpop.xlane.xlu0 %1106 }
 0x4e9   : > { %2942 = vrcp.f32 %v1107_v61 }
 0x4ec   : > { %v1110_v62 = vpop.xlane.xlu1 %1109  ;;  %v1215_v8 = vpop.permute.xlu0 %1214 }
 0x4ed   : > { %2944 = vrcp.f32 %v1110_v62 }
 0x4f0   : > { %v1267_v5 = vpop.permute.xlu1 %1266 }
 0x4f1   : > { %v1272_v7 = vsel %vm995_vm5, %v1267_v5, 0 }
 0x4f3   : > { %v2943_v63 = vpop.eup %2942 }
 0x4f4   : > { %v1113_v0 = vmul.f32 %v2943_v63, %v2939_v56  ;;  %v1265_v9 = vpop.permute.xlu1 %1264 }
 0x4f6   : > { %v1115_v1 = vpack.c.bf16 %v1113_v0, %v1113_v0 }
 0x4f7   : > { %v2945_v2 = vpop.eup %2944 }
 0x4f8   : > { %v1114_v4 = vmul.f32 %v2945_v2, %v2941_v58  ;;  %2690 = vmatmul.mubr.msk.bf16.vlgmr.msra.gmra.mrb[4].mxu1 %vm995_vm5, %v1115_v1 }
 0x4f9   : > { %2700 = vmatpush3.bf16.xpose.msra.mxu1 %v1222_v3  ;;  %2701 = vmatprep.mubr.msk.bf16.mxu1 %vm3197_vm3, %v3196_v16 }
 0x4fa   : > { %v1116_v6 = vpack.c.bf16 %v1114_v4, %v1114_v4  ;;  %2711 = vmatprep.subr.bf16.mxu1 %v3196_v16 }
 0x4fc   : > { %2696 = vmatmul.mubr.msk.bf16.vlgmr.msra.gmra.mrb[8].mxu0 %vm995_vm5, %v1116_v6 }
 0x4fd   : > { %2706 = vmatpush3.bf16.xpose.msra.mxu0 %v1272_v7  ;;  %2707 = vmatprep.mubr.msk.bf16.mxu0 %vm3197_vm3, %v3196_v16 }
 0x4fe   : > { %2717 = vmatprep.subr.bf16.mxu0 %v3196_v16 }
 0x500   : > { %2702 = vmatmul.mubr.msk.bf16.vlgmr.msra.gmra.mrb[8].mxu1 %vm995_vm5, %v1215_v8 }
 0x501   : > { %2713 = vmatprep.mubr.msk.bf16.mxu1 %vm3197_vm3, %v3196_v16 }
 0x504   : > { %2708 = vmatmul.mubr.msk.bf16.vlgmr.msra.gmra.mrb[12].mxu0 %vm995_vm5, %v1265_v9 }
 0x505   : > { %2719 = vmatprep.mubr.msk.bf16.mxu0 %vm3197_vm3, %v3196_v16 }
 0x5cb   : > { %v3661_v10 = vpop.f32.mrb[4].mxu1 }
 0x5cc   : > { %v2691_v11 = vpop.f32.mrb[5].mxu1 }
 0x5cd   : > { %v1163_v12 = vpop.f32.mrb[6].mxu1 }
 0x5ce   : > { %v2692_v13 = vpop.f32.mrb[7].mxu1 }
 0x5cf   : > { %v3663_v14 = vpop.f32.mrb[8].mxu0 }
 0x5d0   : > { %v2697_v15 = vpop.f32.mrb[9].mxu0 }
 0x5d1   : > { %v1211_v17 = vpop.f32.mrb[10].mxu0 }
 0x5d2   : > { %v2698_v20 = vpop.f32.mrb[11].mxu0 }
 0x5d3   : > { %v1258_v21 = vpop.f32.mrb[8].mxu1 }
 0x5d4   : > { %v1314_v22 = vmul.f32 0.35355338, %v1258_v21  ;;  %v2703_v23 = vpop.f32.mrb[9].mxu1 }
 0x5d5   : > { %v1261_v24 = vpop.f32.mrb[10].mxu1 }
 0x5d6   : > { %v2704_v25 = vpop.f32.mrb[11].mxu1  ;;  %v1316_v27 = vsel %vm995_vm5, %v1314_v22, -inf }
 0x5d7   : > { %1317 = vmax.xlane.f32.xlu1 %v1316_v27  ;;  %v1308_v28 = vpop.f32.mrb[12].mxu0 }
 0x5d8   : > { %v1315_v30 = vmul.f32 0.35355338, %v1308_v28  ;;  %v2709_v31 = vpop.f32.mrb[13].mxu0 }
 0x5d9   : > { %v1311_v32 = vpop.f32.mrb[14].mxu0 }
 0x5da   : > { %v2710_v33 = vpop.f32.mrb[15].mxu0  ;;  %v1319_v34 = vsel %vm995_vm5, %v1315_v30, -inf }
 0x5db   : > { %1320 = vmax.xlane.f32.xlu0 %v1319_v34 }
 0x5e8   : > { %1340 = vrot.lane.b32.xlu1 %v3613_v26, %s3202_s17 }
 0x5ec   : > { %1438 = vrot.lane.b32.xlu1 %v3613_v26, %s3203_s3 }
 0x5f1   : > { %1388 = vrot.lane.b32.xlu0 %v3616_v29, %s3202_s17 }
 0x5f5   : > { %1436 = vrot.lane.b32.xlu0 %v3613_v26, %s3204_s21 }
 0x664   : > { %v1318_v35 = vpop.xlane.xlu1 %1317 }
 0x665   : > { %v1322_v36 = vsub.f32 %v1314_v22, %v1318_v35 }
 0x667   : > { %v1324_v37 = vmul.f32 1.442695, %v1322_v36 }
 0x668   : > { %v1341_v38 = vpop.permute.xlu1 %1340  ;;  %v1321_v39 = vpop.xlane.xlu0 %1320 }
 0x669   : > { %2946 = vpow2.f32 %v1324_v37  ;;  %v1346_v40 = vsel %vm1122_vm6, %v1341_v38, 0  ;;  %v1323_v41 = vsub.f32 %v1315_v30, %v1321_v39 }
 0x66a   : > { %2712 = vmatpush3.bf16.msra.mxu1 %v1346_v40 }
 0x66b   : > { %v1326_v42 = vmul.f32 1.442695, %v1323_v41  ;;  %2723 = vmatprep.subr.bf16.mxu1 %v3196_v16 }
 0x66c   : > { %v1389_v43 = vpop.permute.xlu0 %1388  ;;  %v1439_v49 = vpop.permute.xlu1 %1438 }
 0x66d   : > { %2948 = vpow2.f32 %v1326_v42  ;;  %v1394_v44 = vsel %vm1122_vm6, %v1389_v43, 0  ;;  %v1444_v56 = vsel %vm995_vm5, %v1439_v49, 0 }
 0x66e   : > { %2718 = vmatpush3.bf16.msra.mxu0 %v1394_v44 }
 0x66f   : > { %2729 = vmatprep.subr.bf16.mxu0 %v3196_v16 }
 0x670   : > { %v1437_v61 = vpop.permute.xlu0 %1436 }
 0x673   : > { %v2947_v45 = vpop.eup %2946 }
 0x674   : > { %v1328_v46 = vsel %vm995_vm5, %v2947_v45, 0.0 }
 0x675   : > { %1329 = vadd.xlane.f32.xlu1 %v1328_v46 }
 0x677   : > { %v2949_v47 = vpop.eup %2948 }
 0x678   : > { %v1331_v48 = vsel %vm995_vm5, %v2949_v47, 0.0 }
 0x679   : > { %1332 = vadd.xlane.f32.xlu1 %v1331_v48 }
 0x68a   : > { %1488 = vrot.lane.b32.xlu1 %v3616_v29, %s3203_s3 }
 0x68e   : > { %1486 = vrot.lane.b32.xlu1 %v3616_v29, %s3204_s21 }
 0x702   : > { %v1330_v50 = vpop.xlane.xlu1 %1329 }
 0x703   : > { %2950 = vrcp.f32 %v1330_v50 }
 0x706   : > { %v1333_v51 = vpop.xlane.xlu1 %1332 }
 0x707   : > { %2952 = vrcp.f32 %v1333_v51 }
 0x70a   : > { %v1489_v58 = vpop.permute.xlu1 %1488 }
 0x70b   : > { %v1494_v60 = vsel %vm995_vm5, %v1489_v58, 0 }
 0x70d   : > { %v2951_v52 = vpop.eup %2950 }
 0x70e   : > { %v1336_v53 = vmul.f32 %v2951_v52, %v2947_v45  ;;  %v1487_v62 = vpop.permute.xlu1 %1486 }
 0x710   : > { %v1338_v54 = vpack.c.bf16 %v1336_v53, %v1336_v53 }
 0x711   : > { %v2953_v55 = vpop.eup %2952 }
 0x712   : > { %v1337_v57 = vmul.f32 %v2953_v55, %v2949_v47  ;;  %2714 = vmatmul.mubr.msk.bf16.vlgmr.msra.gmra.mrb[12].mxu1 %vm995_vm5, %v1338_v54 }
 0x713   : > { %2724 = vmatpush3.bf16.xpose.msra.mxu1 %v1444_v56  ;;  %2725 = vmatprep.mubr.msk.bf16.mxu1 %vm3197_vm3, %v3196_v16 }
 0x714   : > { %v1339_v59 = vpack.c.bf16 %v1337_v57, %v1337_v57  ;;  %2735 = vmatprep.subr.bf16.mxu1 %v3196_v16 }
 0x716   : > { %2720 = vmatmul.mubr.msk.bf16.vlgmr.msra.gmra.mrb[16].mxu0 %vm995_vm5, %v1339_v59 }
 0x717   : > { %2730 = vmatpush3.bf16.xpose.msra.mxu0 %v1494_v60  ;;  %2731 = vmatprep.mubr.msk.bf16.mxu0 %vm3197_vm3, %v3196_v16 }
 0x718   : > { %2741 = vmatprep.subr.bf16.mxu0 %v3196_v16 }
 0x71a   : > { %2726 = vmatmul.mubr.msk.bf16.vlgmr.msra.gmra.mrb[16].mxu1 %vm995_vm5, %v1437_v61 }
 0x71b   : > { %2737 = vmatprep.mubr.msk.bf16.mxu1 %vm3197_vm3, %v3196_v16 }
 0x71e   : > { %2732 = vmatmul.mubr.msk.bf16.vlgmr.msra.gmra.mrb[20].mxu0 %vm995_vm5, %v1487_v62 }
 0x71f   : > { %2743 = vmatprep.mubr.msk.bf16.mxu0 %vm3197_vm3, %v3196_v16 }
 0x7e5   : > { %v3695_v63 = vpop.f32.mrb[12].mxu1 }
 0x7e6   : > { %v2715_v0 = vpop.f32.mrb[13].mxu1 }
 0x7e7   : > { %v1385_v1 = vpop.f32.mrb[14].mxu1 }
 0x7e8   : > { %v2716_v2 = vpop.f32.mrb[15].mxu1 }
 0x7e9   : > { %v3697_v3 = vpop.f32.mrb[16].mxu0 }
 0x7ea   : > { %v2913_v4 = vpack.i.bf16 %v3697_v3, %v3695_v63  ;;  %v2721_v5 = vpop.f32.mrb[17].mxu0 }
 0x7eb   : > { %v1433_v6 = vpop.f32.mrb[18].mxu0 }
 0x7ec   : > { %v2722_v7 = vpop.f32.mrb[19].mxu0 }
 0x7ed   : > { %v1480_v8 = vpop.f32.mrb[16].mxu1 }
 0x7ee   : > { %v1536_v9 = vmul.f32 0.35355338, %v1480_v8  ;;  %v2727_v11 = vpop.f32.mrb[17].mxu1 }
 0x7ef   : > { %v1483_v12 = vpop.f32.mrb[18].mxu1 }
 0x7f0   : > { %v2728_v13 = vpop.f32.mrb[19].mxu1  ;;  %v1538_v15 = vsel %vm995_vm5, %v1536_v9, -inf }
 0x7f1   : > { %1539 = vmax.xlane.f32.xlu0 %v1538_v15  ;;  %v1530_v17 = vpop.f32.mrb[20].mxu0 }
 0x7f2   : > { %v1537_v20 = vmul.f32 0.35355338, %v1530_v17  ;;  %v2733_v21 = vpop.f32.mrb[21].mxu0 }
 0x7f3   : > { %v1533_v22 = vpop.f32.mrb[22].mxu0 }
 0x7f4   : > { %v2734_v23 = vpop.f32.mrb[23].mxu0  ;;  %v1541_v24 = vsel %vm995_vm5, %v1537_v20, -inf }
 0x7f5   : > { %1542 = vmax.xlane.f32.xlu1 %v1541_v24 }
 0x806   : > { %1562 = vrot.lane.b32.xlu1 %v3613_v26, %s3205_s4 }
 0x80a   : > { %1660 = vrot.lane.b32.xlu1 %v3613_v26, %s3206_s6 }
 0x80e   : > { %1710 = vrot.lane.b32.xlu1 %v3616_v29, %s3206_s6 }
 0x812   : > { %1708 = vrot.lane.b32.xlu1 %v3616_v29, %s3207_s9 }
 0x87e   : > { %v1540_v25 = vpop.xlane.xlu0 %1539 }
 0x87f   : > { %v1544_v27 = vsub.f32 %v1536_v9, %v1540_v25 }
 0x881   : > { %v1546_v28 = vmul.f32 1.442695, %v1544_v27 }
 0x882   : > { %v1543_v30 = vpop.xlane.xlu1 %1542 }
 0x883   : > { %2954 = vpow2.f32 %v1546_v28  ;;  %v1545_v31 = vsub.f32 %v1537_v20, %v1543_v30 }
 0x885   : > { %v1548_v32 = vmul.f32 1.442695, %v1545_v31 }
 0x886   : > { %v1563_v33 = vpop.permute.xlu1 %1562 }
 0x887   : > { %2956 = vpow2.f32 %v1548_v32  ;;  %v1568_v34 = vsel %vm1122_vm6, %v1563_v33, 0 }
 0x888   : > { %2736 = vmatpush3.bf16.msra.mxu1 %v1568_v34 }
 0x889   : > { %2747 = vmatprep.subr.bf16.mxu1 %v3196_v16 }
 0x88a   : > { %v1661_v44 = vpop.permute.xlu1 %1660 }
 0x88b   : > { %v1666_v48 = vsel %vm995_vm5, %v1661_v44, 0 }
 0x88d   : > { %v2955_v35 = vpop.eup %2954 }
 0x88e   : > { %v1550_v36 = vsel %vm995_vm5, %v2955_v35, 0.0  ;;  %v1711_v50 = vpop.permute.xlu1 %1710 }
 0x88f   : > { %1551 = vadd.xlane.f32.xlu0 %v1550_v36  ;;  %v1716_v52 = vsel %vm995_vm5, %v1711_v50, 0 }
 0x891   : > { %v2957_v37 = vpop.eup %2956 }
 0x892   : > { %v1553_v38 = vsel %vm995_vm5, %v2957_v37, 0.0  ;;  %v1709_v54 = vpop.permute.xlu1 %1708 }
 0x893   : > { %1554 = vadd.xlane.f32.xlu0 %v1553_v38 }
 0x8a9   : > { %1610 = vrot.lane.b32.xlu0 %v3616_v29, %s3205_s4 }
 0x8ad   : > { %1658 = vrot.lane.b32.xlu0 %v3613_v26, %s3207_s9  ;;  %s3951_s9 = sld [smem:[#allocation34_spill]] (!%p2597_p4) }
 0x91c   : > { %v1552_v39 = vpop.xlane.xlu0 %1551 }
 0x91d   : > { %2958 = vrcp.f32 %v1552_v39  ;;  %v2930_v39 = vld [vmem:[%s3547_s2] sm:$0xff]  }
 0x920   : > { %v1555_v40 = vpop.xlane.xlu0 %1554 }
 0x921   : > { %2960 = vrcp.f32 %v1555_v40  ;;  %v2931_v40 = vld [vmem:[%s3547_s2 + $0x8] sm:$0xff]  }
 0x924   : > { %v1611_v41 = vpop.permute.xlu0 %1610 }
 0x925   : > { %v1616_v42 = vsel %vm1122_vm6, %v1611_v41, 0 }
 0x926   : > { %2742 = vmatpush3.bf16.msra.mxu0 %v1616_v42 }
 0x927   : > { %v2959_v43 = vpop.eup %2958  ;;  %2753 = vmatprep.subr.bf16.mxu0 %v3196_v16 }
 0x928   : > { %v1558_v45 = vmul.f32 %v2959_v43, %v2955_v35  ;;  %v1659_v53 = vpop.permute.xlu0 %1658 }
 0x92a   : > { %v1560_v46 = vpack.c.bf16 %v1558_v45, %v1558_v45 }
 0x92b   : > { %v2961_v47 = vpop.eup %2960 }
 0x92c   : > { %v1559_v49 = vmul.f32 %v2961_v47, %v2957_v37  ;;  %2738 = vmatmul.mubr.msk.bf16.vlgmr.msra.gmra.mrb[20].mxu1 %vm995_vm5, %v1560_v46 }
 0x92d   : > { %2748 = vmatpush3.bf16.xpose.msra.mxu1 %v1666_v48  ;;  %2749 = vmatprep.mubr.msk.bf16.mxu1 %vm3197_vm3, %v3196_v16 }
 0x92e   : > { %v1561_v51 = vpack.c.bf16 %v1559_v49, %v1559_v49  ;;  %2759 = vmatprep.subr.bf16.mxu1 %v3196_v16 }
 0x930   : > { %2744 = vmatmul.mubr.msk.bf16.vlgmr.msra.gmra.mrb[24].mxu0 %vm995_vm5, %v1561_v51 }
 0x931   : > { %2754 = vmatpush3.bf16.xpose.msra.mxu0 %v1716_v52  ;;  %2755 = vmatprep.mubr.msk.bf16.mxu0 %vm3197_vm3, %v3196_v16 }
 0x932   : > { %2765 = vmatprep.subr.bf16.mxu0 %v3196_v16 }
 0x934   : > { %2750 = vmatmul.mubr.msk.bf16.vlgmr.msra.gmra.mrb[24].mxu1 %vm995_vm5, %v1659_v53 }
 0x935   : > { %2761 = vmatprep.mubr.msk.bf16.mxu1 %vm3197_vm3, %v3196_v16 }
 0x938   : > { %2756 = vmatmul.mubr.msk.bf16.vlgmr.msra.gmra.mrb[28].mxu0 %vm995_vm5, %v1709_v54 }
 0x939   : > { %2767 = vmatprep.mubr.msk.bf16.mxu0 %vm3197_vm3, %v3196_v16 }
 0x9ff   : > { %v1604_v55 = vpop.f32.mrb[20].mxu1 }
 0xa00   : > { %v2739_v56 = vpop.f32.mrb[21].mxu1 }
 0xa01   : > { %v1607_v57 = vpop.f32.mrb[22].mxu1 }
 0xa02   : > { %v2740_v58 = vpop.f32.mrb[23].mxu1 }
 0xa03   : > { %v1652_v59 = vpop.f32.mrb[24].mxu0 }
 0xa04   : > { %v2918_v60 = vpack.i.bf16 %v1652_v59, %v1604_v55  ;;  %v2745_v61 = vpop.f32.mrb[25].mxu0 }
 0xa05   : > { %v1655_v62 = vpop.f32.mrb[26].mxu0 }
 0xa06   : > { %v2746_v0 = vpop.f32.mrb[27].mxu0 }
 0xa07   : > { %v1702_v1 = vpop.f32.mrb[24].mxu1 }
 0xa08   : > { %v1758_v2 = vmul.f32 0.35355338, %v1702_v1  ;;  %v2751_v5 = vpop.f32.mrb[25].mxu1 }
 0xa09   : > { %v1705_v6 = vpop.f32.mrb[26].mxu1 }
 0xa0a   : > { %v2752_v7 = vpop.f32.mrb[27].mxu1  ;;  %v1760_v8 = vsel %vm995_vm5, %v1758_v2, -inf }
 0xa0b   : > { %1761 = vmax.xlane.f32.xlu0 %v1760_v8  ;;  %v1752_v9 = vpop.f32.mrb[28].mxu0 }
 0xa0c   : > { %v1759_v11 = vmul.f32 0.35355338, %v1752_v9  ;;  %v2757_v12 = vpop.f32.mrb[29].mxu0 }
 0xa0d   : > { %v1755_v13 = vpop.f32.mrb[30].mxu0 }
 0xa0e   : > { %v2758_v15 = vpop.f32.mrb[31].mxu0  ;;  %v1763_v17 = vsel %vm995_vm5, %v1759_v11, -inf }
 0xa0f   : > { %1764 = vmax.xlane.f32.xlu1 %v1763_v17 }
 0xa20   : > { %1784 = vrot.lane.b32.xlu1 %v3613_v26, %s3208_s16 }
 0xa24   : > { %2914 = vrot.lane.b32.xlu1 %v2913_v4, %s3209_s12  ;;  %s3952_s12 = sld [smem:[#allocation35_spill]] (!%p2597_p4) }
 0xa28   : > { %2919 = vrot.lane.b32.xlu1 %v2918_v60, %s3210_s14 }
 0xa98   : > { %v1762_v20 = vpop.xlane.xlu0 %1761 }
 0xa99   : > { %v1766_v21 = vsub.f32 %v1758_v2, %v1762_v20 }
 0xa9b   : > { %v1768_v22 = vmul.f32 1.442695, %v1766_v21 }
 0xa9c   : > { %v1765_v23 = vpop.xlane.xlu1 %1764 }
 0xa9d   : > { %2962 = vpow2.f32 %v1768_v22  ;;  %v1767_v24 = vsub.f32 %v1759_v11, %v1765_v23 }
 0xa9f   : > { %v1770_v25 = vmul.f32 1.442695, %v1767_v24 }
 0xaa0   : > { %v1785_v27 = vpop.permute.xlu1 %1784 }
 0xaa1   : > { %2964 = vpow2.f32 %v1770_v25  ;;  %v1790_v28 = vsel %vm1122_vm6, %v1785_v27, 0 }
 0xaa2   : > { %2760 = vmatpush3.bf16.msra.mxu1 %v1790_v28  ;;  %v2932_v28 = vld [vmem:[%s3556_s15] sm:$0xff]  }
 0xaa3   : > { %2771 = vmatprep.subr.bf16.mxu1 %v3196_v16 }
 0xaa4   : > { %v2915_v50 = vpop.permute.xlu1 %2914 }
 0xaa5   : > { %v2917_v52 = vunpack.i.h.bf16 %v2915_v50  ;;  %v2916_v53 = vunpack.i.l.bf16 %v2915_v50 }
 0xaa7   : > { %v2963_v26 = vpop.eup %2962  ;;  %v1905_v57 = vsel %vm995_vm5, %v3663_v14, %v2917_v52  ;;  %v1904_v58 = vsel %vm995_vm5, %v3661_v10, %v2916_v53  ;;  %v2579_v14 = vld [vmem:[%s3944_s22] ss:$0 sm:$0xff] }
 0xaa8   : > { %v1772_v63 = vsel %vm995_vm5, %v2963_v26, 0.0  ;;  %v2920_v51 = vpop.permute.xlu1 %2919 }
 0xaa9   : > { %1773 = vadd.xlane.f32.xlu0 %v1772_v63  ;;  %v2922_v54 = vunpack.i.h.bf16 %v2920_v51  ;;  %v2921_v55 = vunpack.i.l.bf16 %v2920_v51  ;;  %v2934_v63 = vld [vmem:[%s3566_s1] sm:$0xff]  }
 0xaab   : > { %v2965_v3 = vpop.eup %2964  ;;  %v1907_v61 = vsel %vm1906_vm7, %v1904_v58, %v2921_v55  ;;  %v1908_v62 = vsel %vm1906_vm7, %v1905_v57, %v2922_v54 }
 0xaac   : > { %v1775_v4 = vsel %vm995_vm5, %v2965_v3, 0.0 }
 0xaad   : > { %1776 = vadd.xlane.f32.xlu0 %v1775_v4 }
 0xac3   : > { %1832 = vrot.lane.b32.xlu0 %v3616_v29, %s3208_s16 }
 0xb36   : > { %v1774_v30 = vpop.xlane.xlu0 %1773 }
 0xb37   : > { %2966 = vrcp.f32 %v1774_v30 }
 0xb3a   : > { %v1777_v31 = vpop.xlane.xlu0 %1776 }
 0xb3b   : > { %2968 = vrcp.f32 %v1777_v31 }
 0xb3e   : > { %v1833_v32 = vpop.permute.xlu0 %1832 }
 0xb3f   : > { %v1838_v33 = vsel %vm1122_vm6, %v1833_v32, 0 }
 0xb40   : > { %2766 = vmatpush3.bf16.msra.mxu0 %v1838_v33 }
 0xb41   : > { %v2967_v34 = vpop.eup %2966  ;;  %2779 = vmatprep.subr.bf16.mxu0 %v3196_v16 }
 0xb42   : > { %v1780_v35 = vmul.f32 %v2967_v34, %v2963_v26  ;;  %v2933_v26 = vld [vmem:[%s3556_s15 + $0x8] sm:$0xff]   ;;  %s3945_s15 = scalar_lea.vmem [#allocation6], %s3516_s10 }
 0xb44   : > { %v1782_v36 = vpack.c.bf16 %v1780_v35, %v1780_v35 }
 0xb45   : > { %v2969_v37 = vpop.eup %2968 }
 0xb46   : > { %v1781_v38 = vmul.f32 %v2969_v37, %v2965_v3  ;;  %2762 = vmatmul.mubr.msk.bf16.vlgmr.msra.gmra.mrb[28].mxu1 %vm995_vm5, %v1782_v36  ;;  %v2935_v3 = vld [vmem:[%s3566_s1 + $0x8] sm:$0xff]   ;;  %v2583_v36 = vld [vmem:[%s3945_s15] ss:$0 sm:$0xff] }
 0xb47   : > { %2775 = vmatprep.mubr.msk.bf16.mxu1 %vm3197_vm3, %v3196_v16  ;;  %2772 = vmatpush3.bf16.msra.mxu1 %v2930_v39 }
 0xb48   : > { %v1783_v29 = vpack.c.bf16 %v1781_v38, %v1781_v38  ;;  %2773 = vmatprep.subr.bf16.mxu1 %v3196_v16 }
 0xb4a   : > { %2768 = vmatmul.mubr.msk.bf16.vlgmr.msra.gmra.mrb[32].mxu0 %vm995_vm5, %v1783_v29 }
 0xb4b   : > { %2783 = vmatprep.mubr.msk.bf16.mxu0 %vm3197_vm3, %v3196_v16  ;;  %2774 = vmatpush3.bf16.msra.mxu1 %v2931_v40  ;;  %v2584_v40 = vld [vmem:[%s3946_s8] ss:$0 sm:$0xff] }
 0xb4c   : > { %2787 = vmatprep.subr.bf16.mxu1 %v3196_v16  ;;  %2780 = vmatpush3.bf16.msra.mxu0 %v2932_v28  ;;  %v2596_v28 = vld [vmem:[%s844_s25] ss:$0 sm:$0xff] }
 0xb4d   : > { %2781 = vmatprep.subr.bf16.mxu0 %v3196_v16 }
 0xb50   : > { %2782 = vmatpush3.bf16.msra.mxu0 %v2933_v26 }
 0xc19   : > { %v1826_v41 = vpop.f32.mrb[28].mxu1 }
 0xc1a   : > { %v2763_v42 = vpop.f32.mrb[29].mxu1 }
 0xc1b   : > { %v1829_v43 = vpop.f32.mrb[30].mxu1 }
 0xc1c   : > { %v2764_v44 = vpop.f32.mrb[31].mxu1 }
 0xc1d   : > { %v1874_v45 = vpop.f32.mrb[32].mxu0 }
 0xc1e   : > { %v2923_v46 = vpack.i.bf16 %v1874_v45, %v1826_v41  ;;  %v2769_v47 = vpop.f32.mrb[33].mxu0  ;;  %v2936_v45 = vld [vmem:[%s3566_s1 + $0x10] sm:$0xff]  }
 0xc1f   : > { %v1877_v48 = vpop.f32.mrb[34].mxu0  ;;  %v2585_v47 = vld [vmem:[%s3947_s23] ss:$0 sm:$0xff] }
 0xc20   : > { %2924 = vrot.lane.b32.xlu0 %v2923_v46, %s3211_s20  ;;  %v2770_v49 = vpop.f32.mrb[35].mxu0  ;;  %v2937_v46 = vld [vmem:[%s3566_s1 + $0x18] sm:$0xff]  }
 0xc92   : > { %v2925_v56 = vpop.permute.xlu0 %2924 }
 0xc93   : > { %v2927_v59 = vunpack.i.h.bf16 %v2925_v56  ;;  %v2926_v60 = vunpack.i.l.bf16 %v2925_v56 }
 0xc95   : > { %v1911_v0 = vsel %vm1909_vm8, %v1908_v62, %v2927_v59  ;;  %v1910_v1 = vsel %vm1909_vm8, %v1907_v61, %v2926_v60 }
 0xc96   : > { %v1912_v2 = vpack.c.bf16 %v1911_v0, %v1910_v1 }
 0xc98   : > { %2776 = vmatmul.mubr.msk.bf16.vlgmr.msra.gmra.mrb[32].mxu1 %vm945_vm4, %v1912_v2 }
 0xc99   : > { %2795 = vmatprep.mubr.msk.bf16.mxu1 %vm3197_vm3, %v3196_v16  ;;  %2788 = vmatpush3.bf16.msra.mxu1 %v2934_v63 }
 0xc9a   : > { %2789 = vmatprep.subr.bf16.mxu1 %v3196_v16 }
 0xc9d   : > { %2790 = vmatpush3.bf16.msra.mxu1 %v2935_v3 }
 0xc9e   : > { %2791 = vmatprep.subr.bf16.mxu1 %v3196_v16 }
 0xca1   : > { %2792 = vmatpush3.bf16.msra.mxu1 %v2936_v45 }
 0xca2   : > { %2793 = vmatprep.subr.bf16.mxu1 %v3196_v16  ;;  %v2589_v16 = vld [vmem:[%s838_s0] ss:$0 sm:$0xff] }
 0xca5   : > { %2794 = vmatpush3.bf16.msra.mxu1 %v2937_v46 }
 0xd6b   : > { %v1973_v5 = vpop.f32.mrb[32].mxu1 }
 0xd6c   : > { %v1974_v6 = vadd.f32 %v2579_v14, %v1973_v5  ;;  %v2777_v10 = vpop.f32.mrb[33].mxu1 }
 0xd6d   : > { %v1976_v7 = vpop.f32.mrb[34].mxu1 }
 0xd6e   : > { %v1977_v8 = vadd.f32 %v2579_v14, %v1976_v7  ;;  %v2778_v9 = vpop.f32.mrb[35].mxu1  ;;  %v1980_v11 = vadd.f32 %v1974_v6, %v3595_v18 }
 0xd70   : > { %v1984_v12 = vsel %vm945_vm4, %v1980_v11, 0.0  ;;  %v1981_v13 = vadd.f32 %v1977_v8, %v3597_v19 }
 0xd71   : > { %1985 = vadd.xlane.f32.xlu1 %v1984_v12 }
 0xd72   : > { %v1987_v15 = vsel %vm945_vm4, %v1981_v13, 0.0 }
 0xd73   : > { %1988 = vadd.xlane.f32.xlu0 %v1987_v15 }
 0xdfe   : > { %v1986_v17 = vpop.xlane.xlu1 %1985 }
 0xdff   : > { %v1991_v20 = vmul.f32 0.03125, %v1986_v17 }
 0xe00   : > { %v1989_v21 = vpop.xlane.xlu0 %1988 }
 0xe01   : > { %v1993_v22 = vsub.f32 %v1980_v11, %v1991_v20  ;;  %v1992_v23 = vmul.f32 0.03125, %v1989_v21 }
 0xe03   : > { %v1994_v24 = vsub.f32 %v1981_v13, %v1992_v23  ;;  %v1995_v25 = vmul.f32 %v1993_v22, %v1993_v22 }
 0xe05   : > { %v1997_v18 = vsel %vm945_vm4, %v1995_v25, 0.0  ;;  %v1996_v27 = vmul.f32 %v1994_v24, %v1994_v24 }
 0xe06   : > { %1998 = vadd.xlane.f32.xlu0 %v1997_v18  ;;  %v2595_v18 = vld [vmem:[%s841_s18] ss:$0 sm:$0xff] }
 0xe07   : > { %v2000_v19 = vsel %vm945_vm4, %v1996_v27, 0.0 }
 0xe08   : > { %2001 = vadd.xlane.f32.xlu1 %v2000_v19 }
 0xe93   : > { %v1999_v4 = vpop.xlane.xlu0 %1998 }
 0xe94   : > { %v2003_v30 = vmul.f32 0.03125, %v1999_v4 }
 0xe95   : > { %v2002_v31 = vpop.xlane.xlu1 %2001 }
 0xe96   : > { %v2005_v32 = vadd.f32 1e-05, %v2003_v30  ;;  %v2004_v33 = vmul.f32 0.03125, %v2002_v31  ;;  %v2978_v31 = vld [vmem:[%s3951_s9] sm:$0xff] (!%p2597_p4)  }
 0xe98   : > { %2970 = vrsqrt.f32 %v2005_v32  ;;  %v2006_v34 = vadd.f32 1e-05, %v2004_v33 }
 0xe9a   : > { %2972 = vrsqrt.f32 %v2006_v34  ;;  %v3212_v34 = vmov (!%p2597_p4), 0.0  }
 0xe9b   : > { %2799 = vmatprep.subr.bf16.mxu0 (!%p2597_p4), %v3212_v34 }
 0xea2   : > { %v2971_v35 = vpop.eup %2970 }
 0xea3   : > { %v2009_v37 = vmul.f32 %v2971_v35, %v1993_v22  ;;  %v2979_v35 = vld [vmem:[%s3951_s9 + $0x8] sm:$0xff] (!%p2597_p4)  }
 0xea4   : > { %v2973_v38 = vpop.eup %2972 }
 0xea5   : > { %v2017_v29 = vmul.f32 %v2583_v36, %v2009_v37  ;;  %v2010_v39 = vmul.f32 %v2973_v38, %v1994_v24 }
 0xea7   : > { %v2018_v41 = vmul.f32 %v2583_v36, %v2010_v39  ;;  %v2025_v42 = vadd.f32 %v2584_v40, %v2017_v29 }
 0xea9   : > { %v2026_v43 = vadd.f32 %v2584_v40, %v2018_v41  ;;  %v2598_v41 = vld [vmem:[%s3952_s12] ss:$0 sm:$0xff] (!%p2597_p4) }
 0xeab   : > { %v2027_v44 = vpack.c.bf16 %v2026_v43, %v2025_v42 }
 0xead   : > { %2784 = vmatmul.mubr.msk.bf16.vlgmr.msra.gmra.mrb[36].mxu0 %vm945_vm4, %v2027_v44 }
 0xeae   : > { %2800 = vmatpush3.bf16.msra.mxu0 (!%p2597_p4), %v2978_v31  ;;  %2803 = vmatprep.mubr.msk.bf16.mxu0 (!%p2597_p4), %vm3213_vm10, %v3212_v34 }
 0xeaf   : > { %2801 = vmatprep.subr.bf16.mxu0 (!%p2597_p4), %v3212_v34 }
 0xeb2   : > { %2802 = vmatpush3.bf16.msra.mxu0 (!%p2597_p4), %v2979_v35 }
 0xf80   : > { %v2088_v48 = vpop.f32.mrb[36].mxu0 }
 0xf81   : > { %v2089_v49 = vadd.f32 %v2585_v47, %v2088_v48  ;;  %v2785_v50 = vpop.f32.mrb[37].mxu0 }
 0xf82   : > { %v2091_v51 = vpop.f32.mrb[38].mxu0 }
 0xf83   : > { %v2092_v52 = vadd.f32 %v2585_v47, %v2091_v51  ;;  %v2786_v53 = vpop.f32.mrb[39].mxu0  ;;  %v2095_v54 = vmax.f32 %v2089_v49, 0.0 }
 0xf85   : > { %v2096_v55 = vmax.f32 %v2092_v52, 0.0 }
 0xf87   : > { %v2097_v56 = vpack.c.bf16 %v2096_v55, %v2095_v54 }
 0xf89   : > { %2796 = vmatmul.mubr.msk.bf16.vlgmr.msra.gmra.mrb[36].mxu1 %vm2137_vm9, %v2097_v56 }
0x105c   : > { %v2175_v57 = vpop.f32.mrb[36].mxu1 }
0x105d   : > { %v2176_v58 = vadd.f32 %v2589_v16, %v2175_v57  ;;  %v2797_v59 = vpop.f32.mrb[37].mxu1 }
0x105e   : > { %v2178_v60 = vpop.f32.mrb[38].mxu1 }
0x105f   : > { %v2179_v61 = vadd.f32 %v2589_v16, %v2178_v60  ;;  %v2798_v62 = vpop.f32.mrb[39].mxu1  ;;  %v2182_v0 = vadd.f32 %v2176_v58, %v2025_v42 }
0x1061   : > { %v2186_v1 = vsel %vm945_vm4, %v2182_v0, 0.0  ;;  %v2183_v2 = vadd.f32 %v2179_v61, %v2026_v43 }
0x1062   : > { %2187 = vadd.xlane.f32.xlu0 %v2186_v1 }
0x1063   : > { %v2189_v14 = vsel %vm945_vm4, %v2183_v2, 0.0 }
0x1064   : > { %2190 = vadd.xlane.f32.xlu1 %v2189_v14 }
0x10ef   : > { %v2188_v5 = vpop.xlane.xlu0 %2187 }
0x10f0   : > { %v2192_v6 = vmul.f32 0.03125, %v2188_v5 }
0x10f1   : > { %v2191_v10 = vpop.xlane.xlu1 %2190 }
0x10f2   : > { %v2194_v7 = vsub.f32 %v2182_v0, %v2192_v6  ;;  %v2193_v8 = vmul.f32 0.03125, %v2191_v10 }
0x10f4   : > { %v2195_v9 = vsub.f32 %v2183_v2, %v2193_v8  ;;  %v2196_v11 = vmul.f32 %v2194_v7, %v2194_v7 }
0x10f6   : > { %v2198_v12 = vsel %vm945_vm4, %v2196_v11, 0.0  ;;  %v2197_v13 = vmul.f32 %v2195_v9, %v2195_v9 }
0x10f7   : > { %2199 = vadd.xlane.f32.xlu0 %v2198_v12 }
0x10f8   : > { %v2201_v15 = vsel %vm945_vm4, %v2197_v13, 0.0 }
0x10f9   : > { %2202 = vadd.xlane.f32.xlu1 %v2201_v15 }
0x1184   : > { %v2200_v17 = vpop.xlane.xlu0 %2199 }
0x1185   : > { %v2204_v20 = vmul.f32 0.03125, %v2200_v17 }
0x1186   : > { %v2203_v21 = vpop.xlane.xlu1 %2202 }
0x1187   : > { %v2206_v22 = vadd.f32 1e-05, %v2204_v20  ;;  %v2205_v23 = vmul.f32 0.03125, %v2203_v21 }
0x1189   : > { %2974 = vrsqrt.f32 %v2206_v22  ;;  %v2207_v24 = vadd.f32 1e-05, %v2205_v23 }
0x118b   : > { %2976 = vrsqrt.f32 %v2207_v24 }
0x1193   : > { %v2975_v25 = vpop.eup %2974 }
0x1194   : > { %v2210_v27 = vmul.f32 %v2975_v25, %v2194_v7 }
0x1195   : > { %v2977_v19 = vpop.eup %2976 }
0x1196   : > { %v2218_v26 = vmul.f32 %v2595_v18, %v2210_v27  ;;  %v2211_v63 = vmul.f32 %v2977_v19, %v2195_v9  ;;  %2233 = sbr.rel (%p2597_p4) target bundleno = 4732 (0x127c), region = 116 }
0x1198   : > { %v2226_v3 = vadd.f32 %v2596_v28, %v2218_v26  ;;  %v2219_v4 = vmul.f32 %v2595_v18, %v2211_v63 }
0x119a   : > { %2228 = vst.msk [vmem:[#allocation2] sm:$0xff] %vm945_vm4, %v2226_v3  ;;  %v2227_v30 = vadd.f32 %v2596_v28, %v2219_v4  ;;  %v2234_v32 = vpack.c.bf16 (!%p2597_p4), %v2226_v3, %v2226_v3 }
0x119c   : > { %2229 = vst.msk [vmem:[#allocation2 + $0x8] sm:$0xff] %vm945_vm4, %v2227_v30  ;;  %v2235_v33 = vpack.c.bf16 (!%p2597_p4), %v2227_v30, %v2227_v30  ;;  %v2249_v36 = vunpack.c.l.b16 (!%p2597_p4), %v2234_v32 }
0x119e   : > { %v2250_v37 = vunpack.c.l.b16 %v2235_v33  ;;  %v2251_v38 = vrot.slane %v2249_v36, 7 }
0x11a0   : > { %v2252_v29 = vrot.slane %v2250_v37, 6 }
0x11a2   : > { %v2254_v39 = vsel %vm2253_vm11, %v2252_v29, %v2251_v38 }
0x11a3   : > { %v2255_v40 = vpack.c.b16 %v2254_v39, %v2254_v39 }
0x11a5   : > { %2804 = vmatmul.mubr.msk.bf16.vlgmr.msra.gmra.mrb[0].mxu0 %vm945_vm4, %v2255_v40 }
0x1278   : > { %v2305_v42 = vpop.f32.mrb[0].mxu0 }
0x1279   : > { %v2306_v43 = vadd.f32 %v2598_v41, %v2305_v42  ;;  %v2805_v44 = vpop.f32.mrb[1].mxu0 }
0x127a   : > { %v2308_v45 = vpop.f32.mrb[2].mxu0 }
0x127b   : > { %2312 = vst.msk [vmem:[#allocation11] sm:$0x3] %vm2311_vm12, %v2306_v43  ;;  %v2806_v46 = vpop.f32.mrb[3].mxu0 }
0x127c PF: > { %p2838_p7 = scmp.eq.s32.totalorder %s3404_s29, 1  ;;  %s3214_s14 = smov [#allocation11]  }
0x127d   : > { %s2322_s20 = sshll.u32 %s3214_s14, 4  ;;  %s2323_s20 = int_to_ptr.vmem [resolvable:$true] %s2322_s20 }
0x127e   : > { %s3098_s2 = scalar_lea.vmem %s2323_s20, 32  ;;  %p3105_p3 = scmp.lt.s32.totalorder %s2323_s20, %s2323_s20 }
0x127f   : > { %p3099_p2 = scmp.ne.s32.totalorder %s2323_s20, %s3098_s2  ;;  %p3106_p10 = scmp.lt.s32.totalorder %s3098_s2, %s3098_s2 }
0x1281   : > { %p3100_p8 = pnand %p3099_p2, %p2838_p7  ;;  %p3107_p12 = por %p3106_p10, %p3105_p3 }
0x1283   : > { %p3101_p13 = pneg %p3100_p8 }
0x1285   : > { %p3108_p11 = pnand %p3107_p12, %p3101_p13 }
0x1287   : > { %3111 = shalt.err (!%p3108_p11)
}
0x1288   : > { %s3953_s15 = sld [smem:[#allocation36_spill]] }
0x128e   : > { %s3112_s8 = scalar_lea.hbm %s3953_s15, 32 }
0x128f   : > { %p3113_p5 = scmp.ne.s32.totalorder %s3953_s15, %s3112_s8  ;;  %p3118_p0 = scmp.lt.u32.totalorder %s3112_s8, %s3953_s15 }
0x1291   : > { %p3114_p9 = pnand %p3113_p5, %p2838_p7 }
0x1293   : > { %p3115_p6 = pneg %p3114_p9 }
0x1295   : > { %p3120_p1 = pnand %p3118_p0, %p3115_p6 }
0x1297   : > { %3123 = shalt.err (!%p3120_p1)
}
0x1298   : > { %2818 = dma.vmem_to_hbm [thread:$0]  (%p2838_p7), %s2323_s20, 32, %s3953_s15, [#allocation5]  }
0x1299   : > { %3161 = dma.done.wait (%p2838_p7), [#allocation5], 32  }
0x129a   : > { %3163 = vsyncadd (%p2838_p7), [#allocation5], 4294967264 }
0x129b PF: > { %s3954_s1 = sld [smem:[#allocation18_spill]]  ;;  %s3955_s3 = sld [smem:[#allocation16_spill]] }
0x129c   : > { %s3956_s29 = sld [smem:[#allocation20_spill]]  ;;  %s3957_s30 = sld [smem:[#allocation17_spill]] }
0x129d   : > { %s3958_s0 = sld [smem:[#allocation19_spill]]  ;;  %s3959_s27 = smov %s3170_s28 }
0x12a1   : > { %s36_s19 = sadd.s32 1, %s3954_s1   ;;  %s3960_s28 = smov %s3955_s3 }
0x12a2   : > { %p33_p4 = scmp.ge.s32.totalorder %s36_s19, 4  }
0x12a4   :  { %35 = sbr.rel (!%p33_p4) target bundleno = 25 (0x19), region = 197 }
0x12ab   :  { %2335 = vsyncpa [#allocation4], 1 }
0x12ac   :  { %2337 = vsyncpa [#allocation4 + $0x1], 1 }
0x12ad   :  { %2338 = vsyncpa [#allocation7], 1 }
0x12ae   :  { %2340 = vsyncpa [#allocation7 + $0x1], 1 }
0x12af   :  { %2341 = vsyncpa [#allocation10], 1 }
0x12b0   :  { %2343 = vsyncpa [#allocation10 + $0x1], 1 }
0x12b1   :  { %2344 = vsyncpa [#allocation5], 1 }
0x12b2   :  { %2346 = vsyncpa [#allocation5 + $0x1], 1 }

</bundles_post_ra>
